<compile_context>
chip_gen: v6e
topology: v6e:2x2x1
jax: 0.10.0
libtpu: 0.0.40
codegen_flags: <defaults>
</compile_context>

<pallas_src>
import jax
import jax.numpy as jnp
from jax.experimental import pallas as pl
from jax.experimental.pallas import tpu as pltpu

EPS = 1e-5

# VMEM budgets (bytes).  Kept well under v7x's 64 MiB physical VMEM so the
# same plan is valid on v5e / v6e / v7x; the scoped limit is raised above the
# 16/32 MiB defaults via CompilerParams(vmem_limit_bytes=...).
_SINGLE_BLOCK_BUDGET = 28 * 1024 * 1024
_TILED_STEP_BUDGET = 36 * 1024 * 1024
_VMEM_LIMIT_BYTES = 48 * 1024 * 1024


def _round_up(n: int, m: int) -> int:
    return ((n + m - 1) // m) * m


def _estimate_vmem_bytes(B, in_dim, thid, out_dim):
    """Rough per-grid-step VMEM footprint used for tile planning."""
    return (B * in_dim * 4              # x: f32, whole-array resident (single buffer)
            + 2 * in_dim * thid * 2     # w1 tile, bf16, double-buffered
            + 2 * 2 * thid * 4          # gamma + beta tiles, f32, double-buffered
            + 2 * thid * out_dim * 2    # w2 tile, bf16, double-buffered
            + out_dim * 4               # b2, f32, resident
            + 2 * B * out_dim * 4       # resident f32 output accumulator
            + 2 * B * thid * 4)         # headroom for the f32 h / centered temporaries


def choose_hid_tile(B, in_dim, hid_dim, out_dim,
                    max_single_block_bytes=_SINGLE_BLOCK_BUDGET):
    """Pick the hid-dim column tile.

    At small/medium sizes collapse to a single block (grid=(1,)): the whole
    operand set fits VMEM, so every extra grid step is pure pipeline overhead.
    Otherwise pick the largest 256-aligned tile (full MXU passes on v6e/v7x;
    128 tiles are already full passes on v5e) that fits the per-step budget.
    """
    hid128 = _round_up(hid_dim, 128)
    if _estimate_vmem_bytes(B, in_dim, hid128, out_dim) <= max_single_block_bytes:
        return hid128
    for thid in (2048, 1024, 512, 256):
        if thid < hid128 and _estimate_vmem_bytes(B, in_dim, thid, out_dim) <= _TILED_STEP_BUDGET:
            return thid
    return 128


def prepare_projection_head(w1, gamma, beta, w2, b2, *, batch_size,
                            max_single_block_bytes=_SINGLE_BLOCK_BUDGET):
    """One-time parameter prep (hoisted out of the per-step forward call).

    Chooses the hid tile, zero-pads hid to a tile multiple, and casts the
    Linear weights to bf16 MXU operands.  Padded BN features normalize to
    exactly 0 (gamma/beta pads are 0) and hit zero w2 rows -> no contribution.
    """
    in_dim, hid_dim = w1.shape
    out_dim = w2.shape[1]
    thid = choose_hid_tile(batch_size, in_dim, hid_dim, out_dim,
                           max_single_block_bytes)
    hid_pad = _round_up(hid_dim, thid)
    pad = hid_pad - hid_dim

    w1 = jnp.asarray(w1, jnp.float32)
    w2 = jnp.asarray(w2, jnp.float32)
    gamma = jnp.asarray(gamma, jnp.float32).reshape(1, hid_dim)
    beta = jnp.asarray(beta, jnp.float32).reshape(1, hid_dim)
    b2 = jnp.asarray(b2, jnp.float32).reshape(1, out_dim)
    if pad:
        w1 = jnp.pad(w1, ((0, 0), (0, pad)))
        gamma = jnp.pad(gamma, ((0, 0), (0, pad)))
        beta = jnp.pad(beta, ((0, 0), (0, pad)))
        w2 = jnp.pad(w2, ((0, pad), (0, 0)))

    params = (w1.astype(jnp.bfloat16), gamma, beta, w2.astype(jnp.bfloat16), b2)
    return params, thid


def _projection_head_kernel(x_ref, w1_ref, gamma_ref, beta_ref, w2_ref, b2_ref,
                            o_ref):
    j = pl.program_id(0)

    # ---- block 1: Linear(in -> hid, bias=False); bf16 MXU, f32 accumulate ---
    x = x_ref[...].astype(jnp.bfloat16)   # cast in-kernel: no separate XLA pass
    h = jnp.dot(x, w1_ref[...], preferred_element_type=jnp.float32)  # [B, thid]

    # ---- block 1: BatchNorm1d (training mode, biased batch variance) --------
    # Column tiling is exact: BN statistics are per-feature over the full,
    # VMEM-resident batch.  Two-pass variance avoids E[h^2]-mean^2 cancellation.
    mean = jnp.mean(h, axis=0, keepdims=True)
    centered = h - mean
    var = jnp.mean(centered * centered, axis=0, keepdims=True)
    scale = gamma_ref[...] * jax.lax.rsqrt(var + EPS)
    h = centered * scale + beta_ref[...]

    # ---- block 1: ReLU -------------------------------------------------------
    h = jnp.maximum(h, 0.0)

    # ---- block 2: Linear(hid -> out, bias=True) ------------------------------
    # Accumulate this hid-column tile's contribution directly into the resident
    # f32 output block (constant out index map); no VMEM accumulator scratch.
    contrib = jnp.dot(h.astype(jnp.bfloat16), w2_ref[...],
                      preferred_element_type=jnp.float32)

    @pl.when(j == 0)
    def _init():
        o_ref[...] = contrib

    @pl.when(j > 0)
    def _accumulate():
        o_ref[...] = o_ref[...] + contrib

    @pl.when(j == pl.num_programs(0) - 1)
    def _finalize():
        o_ref[...] = o_ref[...] + b2_ref[...]


def projection_head_forward(x, params, thid):
    """Run the fused ProjectionHead forward.  `params, thid` come from
    prepare_projection_head (bf16 weights, hid padded to a multiple of thid)."""
    w1, gamma, beta, w2, b2 = params
    B, in_dim = x.shape
    hid_pad = w1.shape[1]
    out_dim = w2.shape[1]
    grid = (hid_pad // thid,)

    # Constant-index operands live whole in VMEM: single-buffered, never re-DMA'd.
    vmem_resident = pl.BlockSpec(memory_space=pltpu.MemorySpace.VMEM)

    return pl.pallas_call(
        _projection_head_kernel,
        out_shape=jax.ShapeDtypeStruct((B, out_dim), jnp.float32),
        grid_spec=pltpu.PrefetchScalarGridSpec(
            num_scalar_prefetch=0,
            grid=grid,
            in_specs=[
                vmem_resident,                                    # x (resident)
                pl.BlockSpec((in_dim, thid), lambda j: (0, j)),   # w1 column tile
                pl.BlockSpec((1, thid), lambda j: (0, j)),        # gamma tile
                pl.BlockSpec((1, thid), lambda j: (0, j)),        # beta tile
                pl.BlockSpec((thid, out_dim), lambda j: (j, 0)),  # w2 K tile
                vmem_resident,                                    # b2 (resident)
            ],
            out_specs=pl.BlockSpec((B, out_dim), lambda j: (0, 0)),
        ),
        compiler_params=pltpu.CompilerParams(
            # The single grid axis is stage 2's K reduction -> "arbitrary".
            dimension_semantics=("arbitrary",),
            vmem_limit_bytes=_VMEM_LIMIT_BYTES,
        ),
    )(x, w1, gamma, beta, w2, b2)


def reference_forward(x, w1, gamma, beta, w2, b2):
    h = x @ w1
    mean = h.mean(axis=0, keepdims=True)
    var = ((h - mean) ** 2).mean(axis=0, keepdims=True)
    h = (h - mean) / jnp.sqrt(var + EPS) * gamma + beta
    h = jnp.maximum(h, 0.0)
    return h @ w2 + b2


def _make_inputs(key, B, in_dim, hid_dim, out_dim):
    kx, kw1, kg, kb, kw2, kb2 = jax.random.split(key, 6)
    x = jax.random.normal(kx, (B, in_dim), dtype=jnp.float32)
    # PyTorch-equivalent params, Linear weights pre-transposed to
    # [in_features, out_features] so the kernel computes x @ W on the MXU.
    w1 = jax.random.normal(kw1, (in_dim, hid_dim), dtype=jnp.float32) * 0.1
    gamma = 1.0 + 0.1 * jax.random.normal(kg, (1, hid_dim), dtype=jnp.float32)
    beta = 0.1 * jax.random.normal(kb, (1, hid_dim), dtype=jnp.float32)
    w2 = jax.random.normal(kw2, (hid_dim, out_dim), dtype=jnp.float32) * 0.1
    b2 = 0.1 * jax.random.normal(kb2, (1, out_dim), dtype=jnp.float32)
    return x, w1, gamma, beta, w2, b2


if __name__ == "__main__":
    key0, key1 = jax.random.split(jax.random.PRNGKey(0))

    # --- docstring-example head: 256 -> 256 (BN+ReLU) -> 128, B=256 ----------
    # Whole operand set << VMEM -> planner collapses to one block, grid=(1,).
    x, w1, gamma, beta, w2, b2 = _make_inputs(key0, 256, 256, 256, 128)
    params, thid = prepare_projection_head(w1, gamma, beta, w2, b2,
                                           batch_size=x.shape[0])
    out = jax.block_until_ready(projection_head_forward(x, params, thid))
    ref = reference_forward(x, w1, gamma, beta, w2, b2)
    assert out.shape == (256, 128)
    # bf16 MXU operands with f32 accumulation -> loose tolerance vs f32 ref.
    assert jnp.allclose(out, ref, atol=5e-2, rtol=5e-2), "mismatch (single block)"

    # --- non-128-multiple hid + forced tiling: exercises padding and the -----
    # --- multi-step accumulate-into-output path (hid 384 -> padded 512, grid=2).
    x2, w1b, gammab, betab, w2b, b2b = _make_inputs(key1, 64, 256, 384, 128)
    params2, thid2 = prepare_projection_head(w1b, gammab, betab, w2b, b2b,
                                             batch_size=x2.shape[0],
                                             max_single_block_bytes=0)
    out2 = jax.block_until_ready(projection_head_forward(x2, params2, thid2))
    ref2 = reference_forward(x2, w1b, gammab, betab, w2b, b2b)
    assert out2.shape == (64, 128)
    assert jnp.allclose(out2, ref2, atol=5e-2, rtol=5e-2), "mismatch (tiled/padded)"

    print("KERNEL_OK")
</pallas_src>

<mosaic_0001>
module attributes {stable_mosaic.version = 11 : i64} {
  func.func @_projection_head_kernel(%arg0: i32, %arg1: memref<256x256xf32, #tpu.memory_space<vmem>>, %arg2: memref<256x256xbf16, #tpu.memory_space<vmem>>, %arg3: memref<1x256xf32, #tpu.memory_space<vmem>>, %arg4: memref<1x256xf32, #tpu.memory_space<vmem>>, %arg5: memref<256x128xbf16, #tpu.memory_space<vmem>>, %arg6: memref<1x128xf32, #tpu.memory_space<vmem>>, %arg7: memref<256x128xf32, #tpu.memory_space<vmem>>) attributes {dimension_semantics = [#tpu.dimension_semantics<arbitrary>], iteration_bounds = array<i64: 1>, scalar_prefetch = 0 : i64, scratch_operands = 0 : i64, tpu.core_type = #tpu.core_type<tc>, window_params = [{pipeline_mode = #tpu.pipeline_mode<synchronous>, transform_indices = @transform_0, window_bounds = array<i64: 256, 256>}, {transform_indices = @transform_1, window_bounds = array<i64: 256, 256>}, {transform_indices = @transform_2, window_bounds = array<i64: 1, 256>}, {transform_indices = @transform_3, window_bounds = array<i64: 1, 256>}, {transform_indices = @transform_4, window_bounds = array<i64: 256, 128>}, {pipeline_mode = #tpu.pipeline_mode<synchronous>, transform_indices = @transform_5, window_bounds = array<i64: 1, 128>}, {pipeline_mode = #tpu.pipeline_mode<synchronous>, transform_indices = @transform_6, window_bounds = array<i64: 256, 128>}]} {
    %c0 = arith.constant 0 : index
    %c0_0 = arith.constant 0 : index
    %0 = vector.load %arg1[%c0, %c0_0] : memref<256x256xf32, #tpu.memory_space<vmem>>, vector<256x256xf32>
    %1 = arith.truncf %0 : vector<256x256xf32> to vector<256x256xbf16>
    %c0_1 = arith.constant 0 : index
    %c0_2 = arith.constant 0 : index
    %2 = vector.load %arg2[%c0_1, %c0_2] : memref<256x256xbf16, #tpu.memory_space<vmem>>, vector<256x256xbf16>
    %cst = arith.constant dense<0.000000e+00> : vector<256x256xf32>
    %3 = tpu.matmul %1, %2, %cst {dimension_numbers = #tpu.dot_dimension_numbers<[1], [0], [0], [1], [0, 0, 1, 1], [], []>} : vector<256x256xbf16>, vector<256x256xbf16>, vector<256x256xf32> -> vector<256x256xf32>
    %cst_3 = arith.constant dense<0.000000e+00> : vector<256xf32>
    %4 = vector.multi_reduction <add>, %3, %cst_3 [0] : vector<256x256xf32> to vector<256xf32>
    %5 = vector.shape_cast %4 : vector<256xf32> to vector<1x256xf32>
    %cst_4 = arith.constant 2.560000e+02 : f32
    %6 = vector.broadcast %cst_4 : f32 to vector<1x256xf32>
    %7 = arith.divf %5, %6 : vector<1x256xf32>
    %8 = vector.broadcast %7 : vector<1x256xf32> to vector<256x256xf32>
    %9 = arith.subf %3, %8 : vector<256x256xf32>
    %10 = arith.mulf %9, %9 : vector<256x256xf32>
    %cst_5 = arith.constant dense<0.000000e+00> : vector<256xf32>
    %11 = vector.multi_reduction <add>, %10, %cst_5 [0] : vector<256x256xf32> to vector<256xf32>
    %12 = vector.shape_cast %11 : vector<256xf32> to vector<1x256xf32>
    %cst_6 = arith.constant 2.560000e+02 : f32
    %13 = vector.broadcast %cst_6 : f32 to vector<1x256xf32>
    %14 = arith.divf %12, %13 : vector<1x256xf32>
    %c0_7 = arith.constant 0 : index
    %c0_8 = arith.constant 0 : index
    %15 = vector.load %arg3[%c0_7, %c0_8] : memref<1x256xf32, #tpu.memory_space<vmem>>, vector<1x256xf32>
    %cst_9 = arith.constant 9.99999974E-6 : f32
    %16 = vector.broadcast %cst_9 : f32 to vector<1x256xf32>
    %17 = arith.addf %14, %16 : vector<1x256xf32>
    %18 = math.rsqrt %17 : vector<1x256xf32>
    %19 = arith.mulf %15, %18 : vector<1x256xf32>
    %20 = vector.broadcast %19 : vector<1x256xf32> to vector<256x256xf32>
    %21 = arith.mulf %9, %20 : vector<256x256xf32>
    %c0_10 = arith.constant 0 : index
    %c0_11 = arith.constant 0 : index
    %22 = vector.load %arg4[%c0_10, %c0_11] : memref<1x256xf32, #tpu.memory_space<vmem>>, vector<1x256xf32>
    %23 = vector.broadcast %22 : vector<1x256xf32> to vector<256x256xf32>
    %24 = arith.addf %21, %23 : vector<256x256xf32>
    %cst_12 = arith.constant 0.000000e+00 : f32
    %25 = vector.broadcast %cst_12 : f32 to vector<256x256xf32>
    %26 = arith.maximumf %24, %25 : vector<256x256xf32>
    %27 = arith.truncf %26 : vector<256x256xf32> to vector<256x256xbf16>
    %c0_13 = arith.constant 0 : index
    %c0_14 = arith.constant 0 : index
    %28 = vector.load %arg5[%c0_13, %c0_14] : memref<256x128xbf16, #tpu.memory_space<vmem>>, vector<256x128xbf16>
    %cst_15 = arith.constant dense<0.000000e+00> : vector<256x128xf32>
    %29 = tpu.matmul %27, %28, %cst_15 {dimension_numbers = #tpu.dot_dimension_numbers<[1], [0], [0], [1], [0, 0, 1, 1], [], []>} : vector<256x256xbf16>, vector<256x128xbf16>, vector<256x128xf32> -> vector<256x128xf32>
    %c0_i32 = arith.constant 0 : i32
    %30 = arith.cmpi eq, %arg0, %c0_i32 : i32
    %31 = arith.extui %30 : i1 to i32
    %c0_i32_16 = arith.constant 0 : i32
    %32 = arith.cmpi ne, %31, %c0_i32_16 : i32
    scf.if %32 {
      %c0_21 = arith.constant 0 : index
      %c0_22 = arith.constant 0 : index
      %39 = vector.load %arg7[%c0_21, %c0_22] : memref<256x128xf32, #tpu.memory_space<vmem>>, vector<256x128xf32>
      tpu.vector_store %arg7[%c0_21, %c0_22], %29 {strides = array<i32>} : memref<256x128xf32, #tpu.memory_space<vmem>>, vector<256x128xf32>,
    } else {
    }
    %c0_i32_17 = arith.constant 0 : i32
    %33 = arith.cmpi sgt, %arg0, %c0_i32_17 : i32
    %34 = arith.extui %33 : i1 to i32
    %c0_i32_18 = arith.constant 0 : i32
    %35 = arith.cmpi ne, %34, %c0_i32_18 : i32
    scf.if %35 {
      %c0_21 = arith.constant 0 : index
      %c0_22 = arith.constant 0 : index
      %39 = vector.load %arg7[%c0_21, %c0_22] : memref<256x128xf32, #tpu.memory_space<vmem>>, vector<256x128xf32>
      %40 = arith.addf %39, %29 : vector<256x128xf32>
      %c0_23 = arith.constant 0 : index
      %c0_24 = arith.constant 0 : index
      %41 = vector.load %arg7[%c0_23, %c0_24] : memref<256x128xf32, #tpu.memory_space<vmem>>, vector<256x128xf32>
      tpu.vector_store %arg7[%c0_23, %c0_24], %40 {strides = array<i32>} : memref<256x128xf32, #tpu.memory_space<vmem>>, vector<256x128xf32>,
    } else {
    }
    %c0_i32_19 = arith.constant 0 : i32
    %36 = arith.cmpi eq, %arg0, %c0_i32_19 : i32
    %37 = arith.extui %36 : i1 to i32
    %c0_i32_20 = arith.constant 0 : i32
    %38 = arith.cmpi ne, %37, %c0_i32_20 : i32
    scf.if %38 {
      %c0_21 = arith.constant 0 : index
      %c0_22 = arith.constant 0 : index
      %39 = vector.load %arg7[%c0_21, %c0_22] : memref<256x128xf32, #tpu.memory_space<vmem>>, vector<256x128xf32>
      %c0_23 = arith.constant 0 : index
      %c0_24 = arith.constant 0 : index
      %40 = vector.load %arg6[%c0_23, %c0_24] : memref<1x128xf32, #tpu.memory_space<vmem>>, vector<1x128xf32>
      %41 = vector.broadcast %40 : vector<1x128xf32> to vector<256x128xf32>
      %42 = arith.addf %39, %41 : vector<256x128xf32>
      %c0_25 = arith.constant 0 : index
      %c0_26 = arith.constant 0 : index
      %43 = vector.load %arg7[%c0_25, %c0_26] : memref<256x128xf32, #tpu.memory_space<vmem>>, vector<256x128xf32>
      tpu.vector_store %arg7[%c0_25, %c0_26], %42 {strides = array<i32>} : memref<256x128xf32, #tpu.memory_space<vmem>>, vector<256x128xf32>,
    } else {
    }
    return
  }
  func.func @transform_0(%arg0: i32) -> (i32, i32) {
    %c0_i32 = arith.constant 0 : i32
    %c0_i32_0 = arith.constant 0 : i32
    %c0_i32_1 = arith.constant 0 : i32
    return %c0_i32, %c0_i32_0 : i32, i32
  }
  func.func @transform_1(%arg0: i32) -> (i32, i32) {
    %c0_i32 = arith.constant 0 : i32
    %c0_i32_0 = arith.constant 0 : i32
    return %c0_i32, %arg0 : i32, i32
  }
  func.func @transform_2(%arg0: i32) -> (i32, i32) {
    %c0_i32 = arith.constant 0 : i32
    %c0_i32_0 = arith.constant 0 : i32
    return %c0_i32, %arg0 : i32, i32
  }
  func.func @transform_3(%arg0: i32) -> (i32, i32) {
    %c0_i32 = arith.constant 0 : i32
    %c0_i32_0 = arith.constant 0 : i32
    return %c0_i32, %arg0 : i32, i32
  }
  func.func @transform_4(%arg0: i32) -> (i32, i32) {
    %c0_i32 = arith.constant 0 : i32
    %c0_i32_0 = arith.constant 0 : i32
    return %arg0, %c0_i32 : i32, i32
  }
  func.func @transform_5(%arg0: i32) -> (i32, i32) {
    %c0_i32 = arith.constant 0 : i32
    %c0_i32_0 = arith.constant 0 : i32
    %c0_i32_1 = arith.constant 0 : i32
    return %c0_i32, %c0_i32_0 : i32, i32
  }
  func.func @transform_6(%arg0: i32) -> (i32, i32) {
    %c0_i32 = arith.constant 0 : i32
    %c0_i32_0 = arith.constant 0 : i32
    %c0_i32_1 = arith.constant 0 : i32
    return %c0_i32, %c0_i32_0 : i32, i32
  }
}

</mosaic_0001>

<bundles_post_ra>
// kernel: tpu_custom_call.1
= control target key start
LH: loop header
LB: loop body
LE: loop exit
PB: predicated region body
PF: predicated region fallthrough
CT: control target
= control target key end

     0   :  { %11 = vsyncpa [#allocation3], 0  ;;  %s3018_s0 = inlined_call_operand.hbm [shape: f32[256,256], index: 0, kind: input, shape index: {}]   ;;  %s3019_s1 = inlined_call_operand.hbm [shape: bf16[256,256], index: 1, kind: input, shape index: {}]   ;;  %s3020_s2 = inlined_call_operand.vmem [shape: f32[1,256], index: 2, kind: input, shape index: {}]   ;;  %s3021_s3 = inlined_call_operand.vmem [shape: f32[1,256], index: 3, kind: input, shape index: {}]   ;;  %s3022_s4 = inlined_call_operand.hbm [shape: bf16[256,128], index: 4, kind: input, shape index: {}]   ;;  %s3023_s5 = inlined_call_operand.vmem [shape: f32[1,128], index: 5, kind: input, shape index: {}]   ;;  %s3024_s6 = inlined_call_operand.hbm [shape: f32[256,128], index: 6, kind: output, shape index: {}]  }
   0x1   :  { %12 = vsyncpa [#allocation6], 0 }
   0x2   :  { %13 = vsyncpa [#allocation4], 0  ;;  %s1974_s21 = smov [#allocation5]  }
   0x3   :  { %s31_s22 = sshll.u32 %s1974_s21, 4  ;;  %s32_s22 = int_to_ptr.vmem [resolvable:$true] %s31_s22 }
   0x4   :  { %s1896_s23 = scalar_lea.vmem %s32_s22, 4096  ;;  %p1901_p1 = scmp.lt.s32.totalorder %s32_s22, %s32_s22 }
   0x5   :  { %p1897_p0 = scmp.ne.s32.totalorder %s32_s22, %s1896_s23  ;;  %p1902_p2 = scmp.lt.s32.totalorder %s1896_s23, %s1896_s23 }
   0x7   :  { %p1903_p3 = por %p1902_p2, %p1901_p1 }
   0x9   :  { %p1904_p4 = pnand %p1903_p3, %p1897_p0 }
   0xb   :  { %1907 = shalt.err (!%p1904_p4)
}
   0xc   :  { %s1975_s24 = smov 128   ;;  %s1976_s25 = smov 8  }
   0xd   :  { %37 = dma.hbm_to_vmem [thread:$0]  %s3019_s1, 4096, %s32_s22, [#allocation6], %s1975_s24, %s1975_s24, %s1976_s25  }
   0xe   :  { %s1977_s28 = smov [#allocation2]  }
   0xf   :  { %s19_s29 = sshll.u32 %s1977_s28, 4  ;;  %s20_s29 = int_to_ptr.vmem [resolvable:$true] %s19_s29 }
  0x10   :  { %s1916_s30 = scalar_lea.vmem %s20_s29, 8192  ;;  %p1921_p6 = scmp.lt.s32.totalorder %s20_s29, %s20_s29 }
  0x11   :  { %p1917_p5 = scmp.ne.s32.totalorder %s20_s29, %s1916_s30  ;;  %p1922_p7 = scmp.lt.s32.totalorder %s1916_s30, %s1916_s30 }
  0x13   :  { %p1923_p8 = por %p1922_p7, %p1921_p6 }
  0x15   :  { %p1924_p9 = pnand %p1923_p8, %p1917_p5 }
  0x17   :  { %1927 = shalt.err (!%p1924_p9)
}
  0x18   :  { %s1978_s7 = smov 256   ;;  %s1979_s8 = smov 16  }
  0x19   :  { %25 = dma.hbm_to_vmem [thread:$0]  %s3018_s0, 8192, %s20_s29, [#allocation3], %s1978_s7, %s1978_s7, %s1979_s8  }
  0x1a   :  { %s1980_s11 = smov [#allocation7]  }
  0x1b   :  { %s47_s12 = sshll.u32 %s1980_s11, 4  ;;  %s48_s12 = int_to_ptr.vmem [resolvable:$true] %s47_s12 }
  0x1c   :  { %s1936_s1 = scalar_lea.vmem %s48_s12, 2048  ;;  %p1941_p11 = scmp.lt.s32.totalorder %s48_s12, %s48_s12 }
  0x1d   :  { %p1937_p10 = scmp.ne.s32.totalorder %s48_s12, %s1936_s1  ;;  %p1942_p12 = scmp.lt.s32.totalorder %s1936_s1, %s1936_s1 }
  0x1f   :  { %p1943_p13 = por %p1942_p12, %p1941_p11 }
  0x21   :  { %p1944_p0 = pnand %p1943_p13, %p1937_p10 }
  0x23   :  { %1947 = shalt.err (!%p1944_p0)
}
  0x24   :  { %s1981_s13 = smov 64   ;;  %s1982_s14 = smov 4  }
  0x25   :  { %53 = dma.hbm_to_vmem [thread:$0]  %s3022_s4, 2048, %s48_s12, [#allocation6], %s1981_s13, %s1981_s13, %s1982_s14  }
  0x26   :  { %1968 = dma.done.wait [#allocation3], 8192  }
  0x27   :  { %1969 = vsyncadd [#allocation3], 4294959104 }
  0x28   :  { %1970 = dma.done.wait [#allocation6], 6144  }
  0x29   :  { %1971 = vsyncadd [#allocation6], 4294961152  ;;  %v1820_v0 = vld [vmem:[#allocation5 + $0x74] ss:$8 sps:$4 sm:$0xff]   ;;  %v1822_v1 = vld [vmem:[#allocation5 + $0x70] ss:$8 sps:$4 sm:$0xff]  }
  0x2a   :  { %354 = vmatprep.subr.bf16.mxu0 %v1820_v0  ;;  %v1823_v2 = vld [vmem:[#allocation5 + $0x64] ss:$8 sps:$4 sm:$0xff]   ;;  %v1825_v3 = vld [vmem:[#allocation5 + $0x60] ss:$8 sps:$4 sm:$0xff]   ;;  %v1826_v4 = vld [vmem:[#allocation5 + $0x54] ss:$8 sps:$4 sm:$0xff]  }
  0x2b   :  { %355 = vmatpush1.bf16.msra.mxu0 %v1822_v1  ;;  %v1828_v5 = vld [vmem:[#allocation5 + $0x50] ss:$8 sps:$4 sm:$0xff]   ;;  %v1829_v6 = vld [vmem:[#allocation5 + $0x44] ss:$8 sps:$4 sm:$0xff]   ;;  %v1831_v7 = vld [vmem:[#allocation5 + $0x40] ss:$8 sps:$4 sm:$0xff]  }
  0x2c   :  { %356 = vmatprep.subr.bf16.mxu0 %v1823_v2  ;;  %v1832_v8 = vld [vmem:[#allocation5 + $0x34] ss:$8 sps:$4 sm:$0xff]   ;;  %v1834_v9 = vld [vmem:[#allocation5 + $0x30] ss:$8 sps:$4 sm:$0xff]   ;;  %v1835_v10 = vld [vmem:[#allocation5 + $0x24] ss:$8 sps:$4 sm:$0xff]  }
  0x2d   :  { %v1837_v11 = vld [vmem:[#allocation5 + $0x20] ss:$8 sps:$4 sm:$0xff]   ;;  %v1838_v12 = vld [vmem:[#allocation5 + $0x14] ss:$8 sps:$4 sm:$0xff]   ;;  %v1840_v16 = vld [vmem:[#allocation5 + $0x10] ss:$8 sps:$4 sm:$0xff]  }
  0x2e   :  { %v67_v13 = vld [vmem:[#allocation2 + $0x8] sm:$0xff]  ;;  %v69_v14 = vld [vmem:[#allocation2 + $0x18] sm:$0xff]  ;;  %v66_v35 = vld [vmem:[#allocation2] sm:$0xff] }
  0x2f   :  { %357 = vmatpush1.bf16.msra.mxu0 %v1825_v3  ;;  %v131_v15 = vpack.c.bf16 %v69_v14, %v67_v13  ;;  %v1841_v17 = vld [vmem:[#allocation5 + $0x4] ss:$8 sps:$4 sm:$0xff]   ;;  %v1843_v18 = vld [vmem:[#allocation5] ss:$8 sps:$4 sm:$0xff]   ;;  %v1844_v19 = vld [vmem:[#allocation5 + $0xf4] ss:$8 sps:$4 sm:$0xff]  }
  0x30   :  { %358 = vmatprep.subr.bf16.mxu0 %v1826_v4  ;;  %v1846_v20 = vld [vmem:[#allocation5 + $0xf0] ss:$8 sps:$4 sm:$0xff]   ;;  %v1847_v21 = vld [vmem:[#allocation5 + $0xe4] ss:$8 sps:$4 sm:$0xff]   ;;  %v1849_v22 = vld [vmem:[#allocation5 + $0xe0] ss:$8 sps:$4 sm:$0xff]  }
  0x31   :  { %386 = vmatprep.mubr.bf16.mxu0 %v131_v15  ;;  %v1850_v23 = vld [vmem:[#allocation5 + $0xd4] ss:$8 sps:$4 sm:$0xff]   ;;  %v1852_v24 = vld [vmem:[#allocation5 + $0xd0] ss:$8 sps:$4 sm:$0xff]   ;;  %v1853_v25 = vld [vmem:[#allocation5 + $0xc4] ss:$8 sps:$4 sm:$0xff]  }
  0x32   :  { %v1855_v26 = vld [vmem:[#allocation5 + $0xc0] ss:$8 sps:$4 sm:$0xff]   ;;  %v1856_v27 = vld [vmem:[#allocation5 + $0xb4] ss:$8 sps:$4 sm:$0xff]   ;;  %v1858_v28 = vld [vmem:[#allocation5 + $0xb0] ss:$8 sps:$4 sm:$0xff]  }
  0x33   :  { %359 = vmatpush1.bf16.msra.mxu0 %v1828_v5  ;;  %v1859_v29 = vld [vmem:[#allocation5 + $0xa4] ss:$8 sps:$4 sm:$0xff]   ;;  %v1861_v30 = vld [vmem:[#allocation5 + $0xa0] ss:$8 sps:$4 sm:$0xff]   ;;  %v1862_v31 = vld [vmem:[#allocation5 + $0x94] ss:$8 sps:$4 sm:$0xff]  }
  0x34   :  { %360 = vmatprep.subr.bf16.mxu0 %v1829_v6  ;;  %v1864_v32 = vld [vmem:[#allocation5 + $0x90] ss:$8 sps:$4 sm:$0xff]   ;;  %v1865_v33 = vld [vmem:[#allocation5 + $0x84] ss:$8 sps:$4 sm:$0xff]   ;;  %v1867_v34 = vld [vmem:[#allocation5 + $0x80] ss:$8 sps:$4 sm:$0xff]  }
  0x35   :  { %v68_v36 = vld [vmem:[#allocation2 + $0x10] sm:$0xff]  ;;  %v71_v37 = vld [vmem:[#allocation2 + $0x28] sm:$0xff]  ;;  %v73_v38 = vld [vmem:[#allocation2 + $0x38] sm:$0xff] }
  0x36   :  { %v130_v39 = vpack.c.bf16 %v68_v36, %v66_v35  ;;  %v133_v40 = vpack.c.bf16 %v73_v38, %v71_v37  ;;  %v70_v41 = vld [vmem:[#allocation2 + $0x20] sm:$0xff]  ;;  %v72_v42 = vld [vmem:[#allocation2 + $0x30] sm:$0xff]  ;;  %v75_v43 = vld [vmem:[#allocation2 + $0x48] sm:$0xff] }
  0x37   :  { %361 = vmatpush1.bf16.msra.mxu0 %v1831_v7  ;;  %v77_v44 = vld [vmem:[#allocation2 + $0x58] sm:$0xff]  ;;  %v132_v45 = vpack.c.bf16 %v72_v42, %v70_v41  ;;  %v74_v47 = vld [vmem:[#allocation2 + $0x40] sm:$0xff]  ;;  %v76_v48 = vld [vmem:[#allocation2 + $0x50] sm:$0xff] }
  0x38   :  { %362 = vmatprep.subr.bf16.mxu0 %v1832_v8  ;;  %v135_v46 = vpack.c.bf16 %v77_v44, %v75_v43  ;;  %v79_v49 = vld [vmem:[#allocation2 + $0x68] sm:$0xff]  ;;  %v81_v50 = vld [vmem:[#allocation2 + $0x78] sm:$0xff]  ;;  %v134_v51 = vpack.c.bf16 %v76_v48, %v74_v47  ;;  %v78_v53 = vld [vmem:[#allocation2 + $0x60] sm:$0xff] }
  0x39   :  { %v137_v52 = vpack.c.bf16 %v81_v50, %v79_v49  ;;  %v80_v54 = vld [vmem:[#allocation2 + $0x70] sm:$0xff]  ;;  %v83_v55 = vld [vmem:[#allocation2 + $0x88] sm:$0xff]  ;;  %v85_v56 = vld [vmem:[#allocation2 + $0x98] sm:$0xff] }
  0x3a   :  { %v136_v57 = vpack.c.bf16 %v80_v54, %v78_v53  ;;  %v139_v58 = vpack.c.bf16 %v85_v56, %v83_v55  ;;  %v82_v59 = vld [vmem:[#allocation2 + $0x80] sm:$0xff]  ;;  %v84_v60 = vld [vmem:[#allocation2 + $0x90] sm:$0xff]  ;;  %v87_v61 = vld [vmem:[#allocation2 + $0xa8] sm:$0xff] }
  0x3b   :  { %363 = vmatpush1.bf16.msra.mxu0 %v1834_v9  ;;  %v89_v62 = vld [vmem:[#allocation2 + $0xb8] sm:$0xff]  ;;  %v138_v63 = vpack.c.bf16 %v84_v60, %v82_v59  ;;  %v86_v1 = vld [vmem:[#allocation2 + $0xa0] sm:$0xff]  ;;  %v88_v2 = vld [vmem:[#allocation2 + $0xb0] sm:$0xff] }
  0x3c   :  { %364 = vmatprep.subr.bf16.mxu0 %v1835_v10  ;;  %v141_v0 = vpack.c.bf16 %v89_v62, %v87_v61  ;;  %v91_v3 = vld [vmem:[#allocation2 + $0xc8] sm:$0xff]  ;;  %v93_v4 = vld [vmem:[#allocation2 + $0xd8] sm:$0xff]  ;;  %v140_v5 = vpack.c.bf16 %v88_v2, %v86_v1  ;;  %v90_v7 = vld [vmem:[#allocation2 + $0xc0] sm:$0xff] }
  0x3d   :  { %v143_v6 = vpack.c.bf16 %v93_v4, %v91_v3  ;;  %v92_v8 = vld [vmem:[#allocation2 + $0xd0] sm:$0xff]  ;;  %v95_v9 = vld [vmem:[#allocation2 + $0xe8] sm:$0xff]  ;;  %v97_v10 = vld [vmem:[#allocation2 + $0xf8] sm:$0xff] }
  0x3e   :  { %v94_v13 = vld [vmem:[#allocation2 + $0xe0] sm:$0xff]  ;;  %v96_v14 = vld [vmem:[#allocation2 + $0xf0] sm:$0xff]  ;;  %v99_v15 = vld [vmem:[#allocation2 + $0x108] sm:$0xff] }
  0x3f   :  { %365 = vmatpush1.bf16.msra.mxu0 %v1837_v11  ;;  %v142_v11 = vpack.c.bf16 %v92_v8, %v90_v7  ;;  %v110_v37 = vld [vmem:[#allocation2 + $0x160] sm:$0xff]  ;;  %v112_v38 = vld [vmem:[#allocation2 + $0x170] sm:$0xff] }
  0x40   :  { %366 = vmatprep.subr.bf16.mxu0 %v1838_v12  ;;  %v145_v12 = vpack.c.bf16 %v97_v10, %v95_v9  ;;  %v152_v41 = vpack.c.bf16 %v112_v38, %v110_v37  ;;  %v114_v43 = vld [vmem:[#allocation2 + $0x180] sm:$0xff]  ;;  %v116_v44 = vld [vmem:[#allocation2 + $0x190] sm:$0xff] }
  0x41   :  { %v154_v47 = vpack.c.bf16 %v116_v44, %v114_v43  ;;  %v118_v49 = vld [vmem:[#allocation2 + $0x1a0] sm:$0xff]  ;;  %v120_v50 = vld [vmem:[#allocation2 + $0x1b0] sm:$0xff] }
  0x42   :  { %v156_v53 = vpack.c.bf16 %v120_v50, %v118_v49  ;;  %v122_v55 = vld [vmem:[#allocation2 + $0x1c0] sm:$0xff]  ;;  %v124_v56 = vld [vmem:[#allocation2 + $0x1d0] sm:$0xff] }
  0x43   :  { %367 = vmatpush1.bf16.msra.mxu0 %v1840_v16  ;;  %v101_v16 = vld [vmem:[#allocation2 + $0x118] sm:$0xff]  ;;  %v158_v59 = vpack.c.bf16 %v124_v56, %v122_v55  ;;  %v126_v61 = vld [vmem:[#allocation2 + $0x1e0] sm:$0xff]  ;;  %v128_v62 = vld [vmem:[#allocation2 + $0x1f0] sm:$0xff] }
  0x44   :  { %368 = vmatprep.subr.bf16.mxu0 %v1841_v17  ;;  %v144_v17 = vpack.c.bf16 %v96_v14, %v94_v13 }
  0x47   :  { %369 = vmatpush1.bf16.msra.mxu0 %v1843_v18  ;;  %v147_v18 = vpack.c.bf16 %v101_v16, %v99_v15 }
  0x48   :  { %370 = vmatprep.subr.bf16.mxu0 %v1844_v19  ;;  %v98_v19 = vld [vmem:[#allocation2 + $0x100] sm:$0xff] }
  0x4b   :  { %371 = vmatpush2.bf16.msra.mxu0 %v1846_v20  ;;  %v100_v20 = vld [vmem:[#allocation2 + $0x110] sm:$0xff] }
  0x4c   :  { %372 = vmatprep.subr.bf16.mxu0 %v1847_v21  ;;  %v103_v21 = vld [vmem:[#allocation2 + $0x128] sm:$0xff] }
  0x4f   :  { %373 = vmatpush2.bf16.msra.mxu0 %v1849_v22  ;;  %v105_v22 = vld [vmem:[#allocation2 + $0x138] sm:$0xff] }
  0x50   :  { %374 = vmatprep.subr.bf16.mxu0 %v1850_v23  ;;  %v146_v23 = vpack.c.bf16 %v100_v20, %v98_v19 }
  0x53   :  { %375 = vmatpush2.bf16.msra.mxu0 %v1852_v24  ;;  %v149_v24 = vpack.c.bf16 %v105_v22, %v103_v21 }
  0x54   :  { %376 = vmatprep.subr.bf16.mxu0 %v1853_v25  ;;  %v102_v25 = vld [vmem:[#allocation2 + $0x120] sm:$0xff] }
  0x57   :  { %377 = vmatpush2.bf16.msra.mxu0 %v1855_v26  ;;  %v104_v26 = vld [vmem:[#allocation2 + $0x130] sm:$0xff] }
  0x58   :  { %378 = vmatprep.subr.bf16.mxu0 %v1856_v27  ;;  %v107_v27 = vld [vmem:[#allocation2 + $0x148] sm:$0xff] }
  0x5b   :  { %379 = vmatpush2.bf16.msra.mxu0 %v1858_v28  ;;  %v109_v28 = vld [vmem:[#allocation2 + $0x158] sm:$0xff] }
  0x5c   :  { %380 = vmatprep.subr.bf16.mxu0 %v1859_v29  ;;  %v148_v29 = vpack.c.bf16 %v104_v26, %v102_v25 }
  0x5f   :  { %381 = vmatpush2.bf16.msra.mxu0 %v1861_v30  ;;  %v151_v30 = vpack.c.bf16 %v109_v28, %v107_v27 }
  0x60   :  { %382 = vmatprep.subr.bf16.mxu0 %v1862_v31  ;;  %v106_v31 = vld [vmem:[#allocation2 + $0x140] sm:$0xff] }
  0x63   :  { %383 = vmatpush2.bf16.msra.mxu0 %v1864_v32  ;;  %v108_v32 = vld [vmem:[#allocation2 + $0x150] sm:$0xff] }
  0x64   :  { %384 = vmatprep.subr.bf16.mxu0 %v1865_v33  ;;  %v111_v33 = vld [vmem:[#allocation2 + $0x168] sm:$0xff]  ;;  %v150_v35 = vpack.c.bf16 %v108_v32, %v106_v31 }
  0x67   :  { %385 = vmatpush2.bf16.msra.mxu0 %v1867_v34  ;;  %v113_v34 = vld [vmem:[#allocation2 + $0x178] sm:$0xff] }
  0x68   :  { %v153_v36 = vpack.c.bf16 %v113_v34, %v111_v33 }
  0x6a   :  { %387 = vmatmul.mubr.bf16.vlgmr.msra.gmra.mxu0 %v130_v39  ;;  %v115_v39 = vld [vmem:[#allocation2 + $0x188] sm:$0xff] }
  0x6b   :  { %396 = vmatprep.mubr.bf16.mxu0 %v133_v40  ;;  %v117_v40 = vld [vmem:[#allocation2 + $0x198] sm:$0xff] }
  0x6c   :  { %v155_v42 = vpack.c.bf16 %v117_v40, %v115_v39 }
  0x72   :  { %397 = vmatmul.mubr.bf16.gmra.mxu0 %v132_v45  ;;  %v119_v45 = vld [vmem:[#allocation2 + $0x1a8] sm:$0xff] }
  0x73   :  { %406 = vmatprep.mubr.bf16.mxu0 %v135_v46  ;;  %v121_v46 = vld [vmem:[#allocation2 + $0x1b8] sm:$0xff] }
  0x74   :  { %v157_v48 = vpack.c.bf16 %v121_v46, %v119_v45 }
  0x7a   :  { %407 = vmatmul.mubr.bf16.gmra.mxu0 %v134_v51  ;;  %v123_v51 = vld [vmem:[#allocation2 + $0x1c8] sm:$0xff] }
  0x7b   :  { %416 = vmatprep.mubr.bf16.mxu0 %v137_v52  ;;  %v125_v52 = vld [vmem:[#allocation2 + $0x1d8] sm:$0xff] }
  0x7c   :  { %v159_v54 = vpack.c.bf16 %v125_v52, %v123_v51 }
  0x82   :  { %417 = vmatmul.mubr.bf16.gmra.mxu0 %v136_v57  ;;  %v127_v57 = vld [vmem:[#allocation2 + $0x1e8] sm:$0xff] }
  0x83   :  { %426 = vmatprep.mubr.bf16.mxu0 %v139_v58  ;;  %v129_v58 = vld [vmem:[#allocation2 + $0x1f8] sm:$0xff] }
  0x84   :  { %v161_v60 = vpack.c.bf16 %v129_v58, %v127_v57 }
  0x8a   :  { %427 = vmatmul.mubr.bf16.gmra.mxu0 %v138_v63  ;;  %v160_v63 = vpack.c.bf16 %v128_v62, %v126_v61 }
  0x8b   :  { %436 = vmatprep.mubr.bf16.mxu0 %v141_v0 }
  0x92   :  { %437 = vmatmul.mubr.bf16.gmra.mxu0 %v140_v5 }
  0x93   :  { %446 = vmatprep.mubr.bf16.mxu0 %v143_v6 }
  0x9a   :  { %447 = vmatmul.mubr.bf16.gmra.mxu0 %v142_v11 }
  0x9b   :  { %456 = vmatprep.mubr.bf16.mxu0 %v145_v12 }
  0xa2   :  { %457 = vmatmul.mubr.bf16.gmra.mxu0 %v144_v17 }
  0xa3   :  { %466 = vmatprep.mubr.bf16.mxu0 %v147_v18 }
  0xaa   :  { %467 = vmatmul.mubr.bf16.gmra.mxu0 %v146_v23 }
  0xab   :  { %476 = vmatprep.mubr.bf16.mxu0 %v149_v24 }
  0xb2   :  { %477 = vmatmul.mubr.bf16.gmra.mxu0 %v148_v29 }
  0xb3   :  { %486 = vmatprep.mubr.bf16.mxu0 %v151_v30 }
  0xba   :  { %487 = vmatmul.mubr.bf16.gmra.mxu0 %v150_v35 }
  0xbb   :  { %496 = vmatprep.mubr.bf16.mxu0 %v153_v36 }
  0xc2   :  { %497 = vmatmul.mubr.bf16.gmra.mxu0 %v152_v41 }
  0xc3   :  { %506 = vmatprep.mubr.bf16.mxu0 %v155_v42 }
  0xca   :  { %507 = vmatmul.mubr.bf16.gmra.mxu0 %v154_v47 }
  0xcb   :  { %516 = vmatprep.mubr.bf16.mxu0 %v157_v48 }
  0xd2   :  { %517 = vmatmul.mubr.bf16.gmra.mxu0 %v156_v53 }
  0xd3   :  { %526 = vmatprep.mubr.bf16.mxu0 %v159_v54 }
  0xda   :  { %527 = vmatmul.mubr.bf16.gmra.mxu0 %v158_v59 }
  0xdb   :  { %536 = vmatprep.mubr.bf16.mxu0 %v161_v60 }
  0xe2   :  { %537 = vmatmul.mubr.bf16.gmra.mxu0 %v160_v63 }
 0x12a   :  { %v2032_v0 = vpop.f32.mrf.mxu0 }
 0x12c   :  { %v2034_v1 = vpop.f32.mrf.mxu0 }
 0x12e   :  { %v2036_v2 = vpop.f32.mrf.mxu0 }
 0x12f   :  { %v547_v33 = vadd.f32 %v2036_v2, %v2032_v0 }
 0x130   :  { %v2038_v3 = vpop.f32.mrf.mxu0 }
 0x131   :  { %v584_v45 = vadd.f32 %v2038_v3, %v2034_v1 }
 0x132   :  { %v2040_v4 = vpop.f32.mrf.mxu0 }
 0x133   :  { %v548_v35 = vadd.f32 %v547_v33, %v2040_v4 }
 0x134   :  { %v2042_v5 = vpop.f32.mrf.mxu0 }
 0x135   :  { %v585_v48 = vadd.f32 %v584_v45, %v2042_v5 }
 0x136   :  { %v2044_v6 = vpop.f32.mrf.mxu0 }
 0x137   :  { %v549_v37 = vadd.f32 %v548_v35, %v2044_v6 }
 0x138   :  { %v2046_v7 = vpop.f32.mrf.mxu0 }
 0x139   :  { %v586_v51 = vadd.f32 %v585_v48, %v2046_v7 }
 0x13a   :  { %v2048_v8 = vpop.f32.mrf.mxu0 }
 0x13b   :  { %v550_v39 = vadd.f32 %v549_v37, %v2048_v8 }
 0x13c   :  { %v2050_v9 = vpop.f32.mrf.mxu0 }
 0x13d   :  { %v587_v54 = vadd.f32 %v586_v51, %v2050_v9 }
 0x13e   :  { %v2052_v10 = vpop.f32.mrf.mxu0 }
 0x13f   :  { %v551_v41 = vadd.f32 %v550_v39, %v2052_v10 }
 0x140   :  { %v2054_v11 = vpop.f32.mrf.mxu0 }
 0x141   :  { %v588_v57 = vadd.f32 %v587_v54, %v2054_v11 }
 0x142   :  { %v2056_v12 = vpop.f32.mrf.mxu0 }
 0x143   :  { %v552_v43 = vadd.f32 %v551_v41, %v2056_v12 }
 0x144   :  { %v2058_v13 = vpop.f32.mrf.mxu0 }
 0x145   :  { %v589_v60 = vadd.f32 %v588_v57, %v2058_v13 }
 0x146   :  { %v2060_v14 = vpop.f32.mrf.mxu0 }
 0x147   :  { %v553_v46 = vadd.f32 %v552_v43, %v2060_v14 }
 0x148   :  { %v2062_v15 = vpop.f32.mrf.mxu0 }
 0x149   :  { %v590_v63 = vadd.f32 %v589_v60, %v2062_v15 }
 0x14a   :  { %v2064_v16 = vpop.f32.mrf.mxu0 }
 0x14b   :  { %v554_v49 = vadd.f32 %v553_v46, %v2064_v16 }
 0x14c   :  { %v2066_v17 = vpop.f32.mrf.mxu0 }
 0x14d   :  { %v591_v37 = vadd.f32 %v590_v63, %v2066_v17 }
 0x14e   :  { %v2068_v18 = vpop.f32.mrf.mxu0 }
 0x14f   :  { %v555_v52 = vadd.f32 %v554_v49, %v2068_v18 }
 0x150   :  { %v2070_v19 = vpop.f32.mrf.mxu0 }
 0x151   :  { %v592_v43 = vadd.f32 %v591_v37, %v2070_v19 }
 0x152   :  { %v2072_v20 = vpop.f32.mrf.mxu0 }
 0x153   :  { %v556_v55 = vadd.f32 %v555_v52, %v2072_v20 }
 0x154   :  { %v2074_v21 = vpop.f32.mrf.mxu0 }
 0x155   :  { %v593_v48 = vadd.f32 %v592_v43, %v2074_v21 }
 0x156   :  { %v2076_v22 = vpop.f32.mrf.mxu0 }
 0x157   :  { %v557_v58 = vadd.f32 %v556_v55, %v2076_v22 }
 0x158   :  { %v2078_v23 = vpop.f32.mrf.mxu0 }
 0x159   :  { %v594_v52 = vadd.f32 %v593_v48, %v2078_v23 }
 0x15a   :  { %v2080_v24 = vpop.f32.mrf.mxu0 }
 0x15b   :  { %v558_v61 = vadd.f32 %v557_v58, %v2080_v24 }
 0x15c   :  { %v2082_v25 = vpop.f32.mrf.mxu0 }
 0x15d   :  { %v595_v57 = vadd.f32 %v594_v52, %v2082_v25 }
 0x15e   :  { %v2084_v26 = vpop.f32.mrf.mxu0 }
 0x15f   :  { %v559_v33 = vadd.f32 %v558_v61, %v2084_v26 }
 0x160   :  { %v2086_v27 = vpop.f32.mrf.mxu0 }
 0x161   :  { %v596_v61 = vadd.f32 %v595_v57, %v2086_v27 }
 0x162   :  { %v2088_v28 = vpop.f32.mrf.mxu0 }
 0x163   :  { %v560_v39 = vadd.f32 %v559_v33, %v2088_v28 }
 0x164   :  { %v2090_v29 = vpop.f32.mrf.mxu0 }
 0x165   :  { %3064 = vst [vmem:[#allocation12_spill] sm:$0xff] %v2090_v29  ;;  %v597_v37 = vadd.f32 %v596_v61, %v2090_v29 }
 0x166   :  { %v2092_v30 = vpop.f32.mrf.mxu0 }
 0x167   :  { %v561_v45 = vadd.f32 %v560_v39, %v2092_v30 }
 0x168   :  { %v2094_v31 = vpop.f32.mrf.mxu0 }
 0x169   :  { %3065 = vst [vmem:[#allocation13_spill] sm:$0xff] %v2094_v31 }
 0x16a   :  { %v2096_v32 = vpop.f32.mrf.mxu0 }
 0x16b   :  { %v562_v49 = vadd.f32 %v561_v45, %v2096_v32  ;;  %v598_v45 = vadd.f32 %v597_v37, %v2094_v31 }
 0x16c   :  { %v2100_v34 = vpop.f32.mrf.mxu0 }
 0x16d   :  { %3066 = vst [vmem:[#allocation14_spill] sm:$0xff] %v2100_v34  ;;  %v599_v52 = vadd.f32 %v598_v45, %v2100_v34 }
 0x16e   :  { %v2103_v36 = vpop.f32.mrf.mxu0 }
 0x16f   :  { %v563_v54 = vadd.f32 %v562_v49, %v2103_v36 }
 0x170   :  { %v2106_v38 = vpop.f32.mrf.mxu0 }
 0x171   :  { %3067 = vst [vmem:[#allocation15_spill] sm:$0xff] %v2106_v38 }
 0x172   :  { %v2109_v40 = vpop.f32.mrf.mxu0 }
 0x173   :  { %v564_v58 = vadd.f32 %v563_v54, %v2109_v40 }
 0x174   :  { %v2112_v42 = vpop.f32.mrf.mxu0 }
 0x175   :  { %3068 = vst [vmem:[#allocation16_spill] sm:$0xff] %v2112_v42 }
 0x176   :  { %v2115_v44 = vpop.f32.mrf.mxu0 }
 0x177   :  { %v565_v63 = vadd.f32 %v564_v58, %v2115_v44  ;;  %v600_v58 = vadd.f32 %v599_v52, %v2106_v38 }
 0x178   :  { %v2120_v47 = vpop.f32.mrf.mxu0 }
 0x179   :  { %3069 = vst [vmem:[#allocation17_spill] sm:$0xff] %v2120_v47 }
 0x17a   :  { %v2124_v50 = vpop.f32.mrf.mxu0 }
 0x17b   :  { %v566_v39 = vadd.f32 %v565_v63, %v2124_v50  ;;  %v601_v63 = vadd.f32 %v600_v58, %v2112_v42 }
 0x17c   :  { %v2128_v53 = vpop.f32.mrf.mxu0 }
 0x17d   :  { %3070 = vst [vmem:[#allocation18_spill] sm:$0xff] %v2128_v53 }
 0x17e   :  { %v2132_v56 = vpop.f32.mrf.mxu0 }
 0x17f   :  { %v567_v48 = vadd.f32 %v566_v39, %v2132_v56  ;;  %v602_v39 = vadd.f32 %v601_v63, %v2120_v47 }
 0x180   :  { %v2136_v59 = vpop.f32.mrf.mxu0 }
 0x181   :  { %3071 = vst [vmem:[#allocation19_spill] sm:$0xff] %v2136_v59 }
 0x182   :  { %v2140_v62 = vpop.f32.mrf.mxu0 }
 0x183   :  { %v568_v54 = vadd.f32 %v567_v48, %v2140_v62  ;;  %v603_v48 = vadd.f32 %v602_v39, %v2128_v53 }
 0x184   :  { %v2144_v35 = vpop.f32.mrf.mxu0 }
 0x185   :  { %3072 = vst [vmem:[#allocation20_spill] sm:$0xff] %v2144_v35 }
 0x186   :  { %v2148_v41 = vpop.f32.mrf.mxu0 }
 0x187   :  { %v569_v61 = vadd.f32 %v568_v54, %v2148_v41  ;;  %v604_v54 = vadd.f32 %v603_v48, %v2136_v59 }
 0x188   :  { %v2152_v46 = vpop.f32.mrf.mxu0 }
 0x189   :  { %3073 = vst [vmem:[#allocation21_spill] sm:$0xff] %v2152_v46 }
 0x18a   :  { %v2156_v51 = vpop.f32.mrf.mxu0 }
 0x18b   :  { %v570_v37 = vadd.f32 %v569_v61, %v2156_v51  ;;  %v605_v61 = vadd.f32 %v604_v54, %v2144_v35 }
 0x18c   :  { %v2160_v55 = vpop.f32.mrf.mxu0 }
 0x18d   :  { %3074 = vst [vmem:[#allocation22_spill] sm:$0xff] %v2160_v55 }
 0x18e   :  { %v2164_v60 = vpop.f32.mrf.mxu0 }
 0x18f   :  { %v571_v45 = vadd.f32 %v570_v37, %v2164_v60  ;;  %v606_v37 = vadd.f32 %v605_v61, %v2152_v46 }
 0x190   :  { %v2168_v33 = vpop.f32.mrf.mxu0 }
 0x191   :  { %3075 = vst [vmem:[#allocation23_spill] sm:$0xff] %v2168_v33 }
 0x192   :  { %v2172_v43 = vpop.f32.mrf.mxu0 }
 0x193   :  { %v572_v52 = vadd.f32 %v571_v45, %v2172_v43  ;;  %v607_v45 = vadd.f32 %v606_v37, %v2160_v55 }
 0x194   :  { %v2176_v49 = vpop.f32.mrf.mxu0 }
 0x195   :  { %3076 = vst [vmem:[#allocation24_spill] sm:$0xff] %v2176_v49 }
 0x196   :  { %v2180_v57 = vpop.f32.mrf.mxu0 }
 0x197   :  { %v573_v58 = vadd.f32 %v572_v52, %v2180_v57  ;;  %v608_v52 = vadd.f32 %v607_v45, %v2168_v33 }
 0x198   :  { %v2184_v29 = vpop.f32.mrf.mxu0 }
 0x19a   :  { %v2188_v31 = vpop.f32.mrf.mxu0 }
 0x19b   :  { %3077 = vst [vmem:[#allocation25_spill] sm:$0xff] %v2188_v31  ;;  %v574_v63 = vadd.f32 %v573_v58, %v2188_v31  ;;  %v609_v58 = vadd.f32 %v608_v52, %v2176_v49 }
 0x19c   :  { %v2192_v34 = vpop.f32.mrf.mxu0 }
 0x19d   :  { %v610_v31 = vadd.f32 %v609_v58, %v2184_v29  ;;  %v1868_v58 = vld [vmem:[#allocation7 + $0x78] sm:$0xff]  }
 0x19e   :  { %v2196_v38 = vpop.f32.mrf.mxu0  ;;  %1697 = vmatprep.subr.bf16.mxu1 %v1868_v58 }
 0x19f   :  { %3078 = vst [vmem:[#allocation26_spill] sm:$0xff] %v2196_v38  ;;  %v575_v39 = vadd.f32 %v574_v63, %v2196_v38  ;;  %v611_v63 = vadd.f32 %v610_v31, %v2192_v34 }
 0x1a0   :  { %v2200_v42 = vpop.f32.mrf.mxu0 }
 0x1a1   :  { %v612_v38 = vadd.f32 %v611_v63, %v2200_v42 }
 0x1a2   :  { %v2204_v47 = vpop.f32.mrf.mxu0 }
 0x1a3   :  { %3079 = vst [vmem:[#allocation27_spill] sm:$0xff] %v2204_v47  ;;  %v576_v48 = vadd.f32 %v575_v39, %v2204_v47 }
 0x1a4   :  { %v2208_v53 = vpop.f32.mrf.mxu0 }
 0x1a5   :  { %v613_v39 = vadd.f32 %v612_v38, %v2208_v53 }
 0x1a6   :  { %v2212_v59 = vpop.f32.mrf.mxu0 }
 0x1a7   :  { %v577_v54 = vadd.f32 %v576_v48, %v2212_v59 }
 0x1a8   :  { %v2220_v55 = vpop.f32.mrf.mxu0 }
 0x1a9   :  { %v578_v35 = vrot.slane %v577_v54, 4  ;;  %v614_v45 = vadd.f32 %v613_v39, %v2220_v55 }
 0x1ab   :  { %v579_v61 = vadd.f32 %v578_v35, %v577_v54  ;;  %v615_v33 = vrot.slane %v614_v45, 4 }
 0x1ad   :  { %v580_v46 = vrot.slane %v579_v61, 2  ;;  %v616_v49 = vadd.f32 %v615_v33, %v614_v45  ;;  %v1870_v45 = vld [vmem:[#allocation7 + $0x70] sm:$0xff]  }
 0x1af   :  { %v581_v37 = vadd.f32 %v580_v46, %v579_v61  ;;  %v617_v46 = vrot.slane %v616_v49, 2  ;;  %v1869_v61 = vld [vmem:[#allocation7 + $0x38] sm:$0xff]  }
 0x1b0   :  { %1698 = vmatpush3.bf16.msra.mxu1 %v1869_v61 }
 0x1b1   :  { %v582_v47 = vrot.slane %v581_v37, 1  ;;  %v618_v33 = vadd.f32 %v617_v46, %v616_v49  ;;  %1699 = vmatprep.subr.bf16.mxu1 %v1870_v45 }
 0x1b3   :  { %v583_v48 = vadd.f32 %v582_v47, %v581_v37  ;;  %v619_v37 = vrot.slane %v618_v33, 1 }
 0x1b5   :  { %v2224_v52 = vmul.f32 0.00390625, %v583_v48  ;;  %v1871_v48 = vld [vmem:[#allocation7 + $0x30] sm:$0xff]  }
 0x1b6   :  { %1700 = vmatpush3.bf16.msra.mxu1 %v1871_v48  ;;  %v1874_v48 = vld [vmem:[#allocation7 + $0x60] sm:$0xff]  }
 0x1b7   :  { %v2228_v35 = vsub.f32 %v2032_v0, %v2224_v52  ;;  %v2232_v31 = vsub.f32 %v2036_v2, %v2224_v52  ;;  %v2236_v38 = vsub.f32 %v2040_v4, %v2224_v52  ;;  %v2244_v0 = vsub.f32 %v2044_v6, %v2224_v52 }
 0x1b8   :  { %v2248_v2 = vsub.f32 %v2048_v8, %v2224_v52  ;;  %v2254_v49 = vsub.f32 %v2052_v10, %v2224_v52  ;;  %v2260_v8 = vsub.f32 %v2056_v12, %v2224_v52  ;;  %v2266_v10 = vsub.f32 %v2060_v14, %v2224_v52 }
 0x1b9   :  { %v688_v47 = vmul.f32 %v2228_v35, %v2228_v35  ;;  %v690_v54 = vmul.f32 %v2232_v31, %v2232_v31  ;;  %v692_v4 = vmul.f32 %v2236_v38, %v2236_v38  ;;  %v694_v6 = vmul.f32 %v2244_v0, %v2244_v0 }
 0x1ba   :  { %3080 = vst [vmem:[#allocation28_spill] sm:$0xff] %v2254_v49  ;;  %3081 = vst [vmem:[#allocation29_spill] sm:$0xff] %v2260_v8  ;;  %v696_v46 = vmul.f32 %v2248_v2, %v2248_v2  ;;  %v698_v58 = vmul.f32 %v2254_v49, %v2254_v49  ;;  %v2272_v12 = vsub.f32 %v2064_v16, %v2224_v52 }
 0x1bb   :  { %v752_v63 = vadd.f32 %v690_v54, %v688_v47  ;;  %v620_v54 = vadd.f32 %v619_v37, %v618_v33  ;;  %3082 = vst [vmem:[#allocation30_spill] sm:$0xff] %v2266_v10  ;;  %v2280_v14 = vsub.f32 %v2068_v18, %v2224_v52  ;;  %v2286_v16 = vsub.f32 %v2072_v20, %v2224_v52 }
 0x1bc   :  { %3083 = vst [vmem:[#allocation31_spill] sm:$0xff] %v2272_v12 }
 0x1bd   :  { %v753_v39 = vadd.f32 %v752_v63, %v692_v4  ;;  %v1872_v4 = vld [vmem:[#allocation7 + $0x68] sm:$0xff]   ;;  %v2276_v37 = vmul.f32 0.00390625, %v620_v54  ;;  %3084 = vst [vmem:[#allocation32_spill] sm:$0xff] %v2280_v14  ;;  %3085 = vst [vmem:[#allocation33_spill] sm:$0xff] %v2286_v16  ;;  %v706_v20 = vmul.f32 %v2280_v14, %v2280_v14 }
 0x1be   :  { %v1873_v63 = vld [vmem:[#allocation7 + $0x28] sm:$0xff]   ;;  %1701 = vmatprep.subr.bf16.mxu1 %v1872_v4 }
 0x1bf   :  { %v754_v47 = vadd.f32 %v753_v39, %v694_v6  ;;  %v700_v6 = vmul.f32 %v2260_v8, %v2260_v8  ;;  %1702 = vmatpush3.bf16.msra.mxu1 %v1873_v63  ;;  %v702_v39 = vmul.f32 %v2266_v10, %v2266_v10  ;;  %v2296_v18 = vsub.f32 %v2038_v3, %v2276_v37  ;;  %v1876_v63 = vld [vmem:[#allocation7 + $0x58] sm:$0xff]  }
 0x1c0   :  { %1703 = vmatprep.subr.bf16.mxu1 %v1874_v48  ;;  %v1877_v3 = vld [vmem:[#allocation7 + $0x18] sm:$0xff]  }
 0x1c1   :  { %v755_v61 = vadd.f32 %v754_v47, %v696_v46  ;;  %v1875_v46 = vld [vmem:[#allocation7 + $0x20] sm:$0xff]   ;;  %v704_v47 = vmul.f32 %v2272_v12, %v2272_v12 }
 0x1c3   :  { %v756_v33 = vadd.f32 %v755_v61, %v698_v58  ;;  %v2292_v58 = vsub.f32 %v2034_v1, %v2276_v37  ;;  %1704 = vmatpush3.bf16.msra.mxu1 %v1875_v46  ;;  %v2300_v61 = vsub.f32 %v2076_v22, %v2224_v52  ;;  %v708_v1 = vmul.f32 %v2286_v16, %v2286_v16  ;;  %v3115_v16 = vld [vmem:[#allocation21_spill] sm:$0xff] }
 0x1c4   :  { %1705 = vmatprep.subr.bf16.mxu1 %v1876_v63  ;;  %v2336_v63 = vsub.f32 %v2050_v9, %v2276_v37 }
 0x1c5   :  { %v757_v45 = vadd.f32 %v756_v33, %v700_v6  ;;  %3086 = vst [vmem:[#allocation34_spill] sm:$0xff] %v2300_v61  ;;  %v2306_v6 = vsub.f32 %v2080_v24, %v2224_v52  ;;  %v689_v22 = vmul.f32 %v2292_v58, %v2292_v58  ;;  %v2320_v24 = vsub.f32 %v2084_v26, %v2224_v52 }
 0x1c6   :  { %v710_v48 = vmul.f32 %v2300_v61, %v2300_v61 }
 0x1c7   :  { %v758_v54 = vadd.f32 %v757_v45, %v702_v39  ;;  %3087 = vst [vmem:[#allocation35_spill] sm:$0xff] %v2306_v6  ;;  %v2312_v39 = vsub.f32 %v2042_v5, %v2276_v37  ;;  %v691_v45 = vmul.f32 %v2296_v18, %v2296_v18  ;;  %3088 = vst [vmem:[#allocation36_spill] sm:$0xff] %v2320_v24  ;;  %1706 = vmatpush3.bf16.msra.mxu1 %v1877_v3 }
 0x1c8   :  { %v2326_v5 = vsub.f32 %v2046_v7, %v2276_v37  ;;  %v2342_v7 = vsub.f32 %v2092_v30, %v2224_v52 }
 0x1c9   :  { %v759_v4 = vadd.f32 %v758_v54, %v704_v47  ;;  %v1878_v47 = vld [vmem:[#allocation7 + $0x50] sm:$0xff]   ;;  %v2330_v54 = vsub.f32 %v2088_v28, %v2224_v52  ;;  %v789_v3 = vadd.f32 %v691_v45, %v689_v22  ;;  %v714_v28 = vmul.f32 %v2320_v24, %v2320_v24  ;;  %v1881_v45 = vld [vmem:[#allocation7 + $0x8] sm:$0xff]  }
 0x1ca   :  { %1707 = vmatprep.subr.bf16.mxu1 %v1878_v47  ;;  %3090 = vst [vmem:[#allocation38_spill] sm:$0xff] %v2342_v7  ;;  %v695_v9 = vmul.f32 %v2326_v5, %v2326_v5  ;;  %v2354_v22 = vsub.f32 %v2096_v32, %v2224_v52  ;;  %v718_v32 = vmul.f32 %v2342_v7, %v2342_v7 }
 0x1cb   :  { %v760_v33 = vadd.f32 %v759_v4, %v706_v20  ;;  %3089 = vst [vmem:[#allocation37_spill] sm:$0xff] %v2330_v54  ;;  %v712_v20 = vmul.f32 %v2306_v6, %v2306_v6  ;;  %v1879_v4 = vld [vmem:[#allocation7 + $0x10] sm:$0xff]   ;;  %v1880_v6 = vld [vmem:[#allocation7 + $0x48] sm:$0xff]   ;;  %v716_v30 = vmul.f32 %v2330_v54, %v2330_v54 }
 0x1cc   :  { %1708 = vmatpush3.bf16.msra.mxu1 %v1879_v4 }
 0x1cd   :  { %v761_v46 = vadd.f32 %v760_v33, %v708_v1  ;;  %v693_v1 = vmul.f32 %v2312_v39, %v2312_v39  ;;  %1709 = vmatprep.subr.bf16.mxu1 %v1880_v6  ;;  %v2378_v6 = vsub.f32 %v2109_v40, %v2224_v52 }
 0x1cf   :  { %v762_v26 = vadd.f32 %v761_v46, %v710_v48  ;;  %v2348_v48 = vsub.f32 %v2054_v11, %v2276_v37  ;;  %v790_v46 = vadd.f32 %v789_v3, %v693_v1  ;;  %v697_v11 = vmul.f32 %v2336_v63, %v2336_v63  ;;  %v1882_v1 = vld [vmem:[#allocation7 + $0x40] sm:$0xff]  }
 0x1d0   :  { %1710 = vmatpush3.bf16.msra.mxu1 %v1881_v45  ;;  %v1883_v3 = vld [vmem:[#allocation7] sm:$0xff]  }
 0x1d1   :  { %v763_v33 = vadd.f32 %v762_v26, %v712_v20  ;;  %v2360_v20 = vsub.f32 %v2058_v13, %v2276_v37  ;;  %v791_v4 = vadd.f32 %v790_v46, %v695_v9  ;;  %v2366_v26 = vsub.f32 %v2103_v36, %v2224_v52  ;;  %1711 = vmatprep.subr.bf16.mxu1 %v1882_v1 }
 0x1d2   :  { %v2372_v13 = vsub.f32 %v2062_v15, %v2276_v37  ;;  %v720_v36 = vmul.f32 %v2354_v22, %v2354_v22  ;;  %v2402_v1 = vsub.f32 %v2124_v50, %v2224_v52 }
 0x1d3   :  { %v764_v47 = vadd.f32 %v763_v33, %v714_v28  ;;  %3091 = vst [vmem:[#allocation39_spill] sm:$0xff] %v2360_v20  ;;  %v699_v33 = vmul.f32 %v2348_v48, %v2348_v48  ;;  %v792_v9 = vadd.f32 %v791_v4, %v697_v11  ;;  %v701_v15 = vmul.f32 %v2360_v20, %v2360_v20 }
 0x1d4   :  { %3092 = vst [vmem:[#allocation40_spill] sm:$0xff] %v2372_v13  ;;  %v722_v40 = vmul.f32 %v2366_v26, %v2366_v26  ;;  %1712 = vmatpush3.bf16.msra.mxu1 %v1883_v3  ;;  %v2396_v4 = vsub.f32 %v2070_v19, %v2276_v37  ;;  %v2408_v3 = vsub.f32 %v2074_v21, %v2276_v37 }
 0x1d5   :  { %v765_v28 = vadd.f32 %v764_v47, %v716_v30  ;;  %v2384_v30 = vsub.f32 %v2066_v17, %v2276_v37  ;;  %v793_v45 = vadd.f32 %v792_v9, %v699_v33  ;;  %v2390_v47 = vsub.f32 %v2115_v44, %v2224_v52 }
 0x1d6   :  { %3094 = vst [vmem:[#allocation42_spill] sm:$0xff] %v2396_v4  ;;  %v703_v17 = vmul.f32 %v2372_v13, %v2372_v13  ;;  %v724_v44 = vmul.f32 %v2378_v6, %v2378_v6  ;;  %3095 = vst [vmem:[#allocation43_spill] sm:$0xff] %v2408_v3  ;;  %v2414_v9 = vsub.f32 %v2132_v56, %v2224_v52 }
 0x1d7   :  { %v766_v46 = vadd.f32 %v765_v28, %v718_v32  ;;  %3093 = vst [vmem:[#allocation41_spill] sm:$0xff] %v2384_v30  ;;  %v794_v32 = vadd.f32 %v793_v45, %v701_v15  ;;  %v705_v19 = vmul.f32 %v2384_v30, %v2384_v30  ;;  %v726_v50 = vmul.f32 %v2390_v47, %v2390_v47 }
 0x1d8   :  { %v707_v21 = vmul.f32 %v2396_v4, %v2396_v4  ;;  %v2426_v45 = vsub.f32 %v2140_v62, %v2224_v52  ;;  %v728_v56 = vmul.f32 %v2402_v1, %v2402_v1  ;;  %v730_v62 = vmul.f32 %v2414_v9, %v2414_v9 }
 0x1d9   :  { %v767_v11 = vadd.f32 %v766_v46, %v720_v36  ;;  %v795_v33 = vadd.f32 %v794_v32, %v703_v17  ;;  %v2420_v46 = vsub.f32 %v2078_v23, %v2276_v37  ;;  %v709_v23 = vmul.f32 %v2408_v3, %v2408_v3 }
 0x1da   :  { %v2438_v32 = vsub.f32 %v2148_v41, %v2224_v52  ;;  %v732_v41 = vmul.f32 %v2426_v45, %v2426_v45 }
 0x1db   :  { %v768_v28 = vadd.f32 %v767_v11, %v722_v40  ;;  %3096 = vst [vmem:[#allocation44_spill] sm:$0xff] %v2420_v46  ;;  %v796_v15 = vadd.f32 %v795_v33, %v705_v19  ;;  %v2432_v11 = vsub.f32 %v2082_v25, %v2276_v37  ;;  %v711_v25 = vmul.f32 %v2420_v46, %v2420_v46 }
 0x1dc   :  { %v2450_v33 = vsub.f32 %v2156_v51, %v2224_v52  ;;  %v734_v51 = vmul.f32 %v2438_v32, %v2438_v32 }
 0x1dd   :  { %v769_v36 = vadd.f32 %v768_v28, %v724_v44  ;;  %3097 = vst [vmem:[#allocation45_spill] sm:$0xff] %v2432_v11  ;;  %v797_v17 = vadd.f32 %v796_v15, %v707_v21  ;;  %v2444_v28 = vsub.f32 %v2086_v27, %v2276_v37  ;;  %v713_v27 = vmul.f32 %v2432_v11, %v2432_v11 }
 0x1df   :  { %v770_v40 = vadd.f32 %v769_v36, %v726_v50  ;;  %3098 = vst [vmem:[#allocation46_spill] sm:$0xff] %v2444_v28  ;;  %v798_v19 = vadd.f32 %v797_v17, %v709_v23  ;;  %v3099_v36 = vld [vmem:[#allocation12_spill] sm:$0xff]  ;;  %v3101_v23 = vld [vmem:[#allocation13_spill] sm:$0xff] }
 0x1e0   :  { %v2456_v21 = vsub.f32 %v3099_v36, %v2276_v37  ;;  %v2468_v17 = vsub.f32 %v3101_v23, %v2276_v37  ;;  %v2474_v36 = vsub.f32 %v2172_v43, %v2224_v52  ;;  %v2486_v23 = vsub.f32 %v2180_v57, %v2224_v52 }
 0x1e1   :  { %v771_v44 = vadd.f32 %v770_v40, %v728_v56  ;;  %v799_v15 = vadd.f32 %v798_v19, %v711_v25  ;;  %v2462_v56 = vsub.f32 %v2164_v60, %v2224_v52  ;;  %v736_v60 = vmul.f32 %v2450_v33, %v2450_v33  ;;  %v3103_v19 = vld [vmem:[#allocation14_spill] sm:$0xff] }
 0x1e2   :  { %3100 = vst [vmem:[#allocation12_spill] sm:$0xff] %v2456_v21  ;;  %3102 = vst [vmem:[#allocation13_spill] sm:$0xff] %v2468_v17  ;;  %v2480_v7 = vsub.f32 %v3103_v19, %v2276_v37  ;;  %v3107_v19 = vld [vmem:[#allocation25_spill] sm:$0xff]  ;;  %v740_v57 = vmul.f32 %v2474_v36, %v2474_v36 }
 0x1e3   :  { %v772_v50 = vadd.f32 %v771_v44, %v730_v62  ;;  %v715_v62 = vmul.f32 %v2444_v28, %v2444_v28  ;;  %v800_v44 = vadd.f32 %v799_v15, %v713_v27  ;;  %v738_v43 = vmul.f32 %v2462_v56, %v2462_v56  ;;  %v3105_v15 = vld [vmem:[#allocation15_spill] sm:$0xff] }
 0x1e4   :  { %3104 = vst [vmem:[#allocation14_spill] sm:$0xff] %v2480_v7  ;;  %v2492_v54 = vsub.f32 %v3105_v15, %v2276_v37  ;;  %v3109_v15 = vld [vmem:[#allocation26_spill] sm:$0xff] }
 0x1e5   :  { %v773_v40 = vadd.f32 %v772_v50, %v732_v41  ;;  %v717_v41 = vmul.f32 %v2456_v21, %v2456_v21  ;;  %v801_v50 = vadd.f32 %v800_v44, %v715_v62  ;;  %v2498_v21 = vsub.f32 %v3107_v19, %v2224_v52  ;;  %v3108_v44 = vld [vmem:[#allocation16_spill] sm:$0xff]  ;;  %v3110_v19 = vld [vmem:[#allocation17_spill] sm:$0xff] }
 0x1e6   :  { %3106 = vst [vmem:[#allocation15_spill] sm:$0xff] %v2492_v54  ;;  %v2504_v24 = vsub.f32 %v3108_v44, %v2276_v37  ;;  %v2516_v28 = vsub.f32 %v3110_v19, %v2276_v37  ;;  %v3111_v44 = vld [vmem:[#allocation27_spill] sm:$0xff] }
 0x1e7   :  { %v774_v25 = vadd.f32 %v773_v40, %v734_v51  ;;  %v719_v51 = vmul.f32 %v2468_v17, %v2468_v17  ;;  %v802_v40 = vadd.f32 %v801_v50, %v717_v41  ;;  %v2510_v17 = vsub.f32 %v3109_v15, %v2224_v52  ;;  %v3112_v15 = vld [vmem:[#allocation18_spill] sm:$0xff] }
 0x1e8   :  { %v742_v41 = vmul.f32 %v2486_v23, %v2486_v23  ;;  %v2528_v11 = vsub.f32 %v3112_v15, %v2276_v37 }
 0x1e9   :  { %v775_v27 = vadd.f32 %v774_v25, %v736_v60  ;;  %v721_v60 = vmul.f32 %v2480_v7, %v2480_v7  ;;  %v803_v25 = vadd.f32 %v802_v40, %v719_v51  ;;  %v2522_v7 = vsub.f32 %v3111_v44, %v2224_v52 }
 0x1ea   :  { %v744_v51 = vmul.f32 %v2498_v21, %v2498_v21  ;;  %v746_v19 = vmul.f32 %v2510_v17, %v2510_v17 }
 0x1eb   :  { %v776_v62 = vadd.f32 %v775_v27, %v738_v43  ;;  %v723_v43 = vmul.f32 %v2492_v54, %v2492_v54  ;;  %v804_v27 = vadd.f32 %v803_v25, %v721_v60  ;;  %v3113_v25 = vld [vmem:[#allocation19_spill] sm:$0xff]  ;;  %v727_v54 = vmul.f32 %v2516_v28, %v2516_v28 }
 0x1ec   :  { %v2536_v44 = vsub.f32 %v3113_v25, %v2276_v37  ;;  %v748_v15 = vmul.f32 %v2522_v7, %v2522_v7 }
 0x1ed   :  { %v777_v50 = vadd.f32 %v776_v62, %v740_v57  ;;  %v725_v57 = vmul.f32 %v2504_v24, %v2504_v24  ;;  %v805_v62 = vadd.f32 %v804_v27, %v723_v43  ;;  %v3114_v27 = vld [vmem:[#allocation20_spill] sm:$0xff] }
 0x1ee   :  { %v2548_v61 = vsub.f32 %v3114_v27, %v2276_v37 }
 0x1ef   :  { %v778_v40 = vadd.f32 %v777_v50, %v742_v41  ;;  %v806_v41 = vadd.f32 %v805_v62, %v725_v57  ;;  %v2542_v50 = vsub.f32 %v2212_v59, %v2224_v52  ;;  %v2554_v57 = vsub.f32 %v3115_v16, %v2276_v37 }
 0x1f0   :  { %v731_v59 = vmul.f32 %v2536_v44, %v2536_v44  ;;  %v733_v27 = vmul.f32 %v2548_v61, %v2548_v61 }
 0x1f1   :  { %v779_v60 = vadd.f32 %v778_v40, %v744_v51  ;;  %v729_v51 = vmul.f32 %v2528_v11, %v2528_v11  ;;  %v807_v40 = vadd.f32 %v806_v41, %v727_v54  ;;  %v750_v62 = vmul.f32 %v2542_v50, %v2542_v50 }
 0x1f3   :  { %v780_v43 = vadd.f32 %v779_v60, %v746_v19  ;;  %v808_v52 = vadd.f32 %v807_v40, %v729_v51  ;;  %v3116_v19 = vld [vmem:[#allocation22_spill] sm:$0xff]  ;;  %v3118_v40 = vld [vmem:[#allocation24_spill] sm:$0xff] }
 0x1f4   :  { %v2562_v60 = vsub.f32 %v3116_v19, %v2276_v37  ;;  %v2574_v46 = vsub.f32 %v3118_v40, %v2276_v37 }
 0x1f5   :  { %v781_v25 = vadd.f32 %v780_v43, %v748_v15  ;;  %v809_v54 = vadd.f32 %v808_v52, %v731_v59  ;;  %v3117_v15 = vld [vmem:[#allocation23_spill] sm:$0xff]  ;;  %v735_v43 = vmul.f32 %v2554_v57, %v2554_v57 }
 0x1f6   :  { %v2568_v16 = vsub.f32 %v3117_v15, %v2276_v37  ;;  %v737_v19 = vmul.f32 %v2562_v60, %v2562_v60 }
 0x1f7   :  { %v782_v41 = vadd.f32 %v781_v25, %v750_v62  ;;  %v810_v51 = vadd.f32 %v809_v54, %v733_v27  ;;  %v2580_v25 = vsub.f32 %v2184_v29, %v2276_v37  ;;  %v2586_v62 = vsub.f32 %v2192_v34, %v2276_v37 }
 0x1f8   :  { %v739_v59 = vmul.f32 %v2568_v16, %v2568_v16  ;;  %v741_v27 = vmul.f32 %v2574_v46, %v2574_v46 }
 0x1f9   :  { %v811_v3 = vadd.f32 %v810_v51, %v735_v43  ;;  %v783_v14 = vrot.slane %v782_v41, 4  ;;  %v2592_v43 = vsub.f32 %v2200_v42, %v2276_v37  ;;  %v743_v29 = vmul.f32 %v2580_v25, %v2580_v25 }
 0x1fa   :  { %v745_v34 = vmul.f32 %v2586_v62, %v2586_v62 }
 0x1fb   :  { %v812_v52 = vadd.f32 %v811_v3, %v737_v19  ;;  %v784_v15 = vadd.f32 %v783_v14, %v782_v41  ;;  %v2598_v3 = vsub.f32 %v2208_v53, %v2276_v37  ;;  %v687_v14 = vsub.f32 %v2220_v55, %v2276_v37 }
 0x1fc   :  { %v747_v42 = vmul.f32 %v2592_v43, %v2592_v43 }
 0x1fd   :  { %v813_v54 = vadd.f32 %v812_v52, %v739_v59  ;;  %v785_v19 = vrot.slane %v784_v15, 2  ;;  %v749_v59 = vmul.f32 %v2598_v3, %v2598_v3 }
 0x1ff   :  { %v814_v51 = vadd.f32 %v813_v54, %v741_v27  ;;  %v786_v27 = vadd.f32 %v785_v19, %v784_v15  ;;  %v751_v54 = vmul.f32 %v687_v14, %v687_v14  ;;  %v839_v15 = vlaneseq }
 0x201   :  { %v815_v40 = vadd.f32 %v814_v51, %v743_v29  ;;  %v787_v4 = vrot.slane %v786_v27, 1 }
 0x203   :  { %v816_v41 = vadd.f32 %v815_v40, %v745_v34  ;;  %v788_v29 = vadd.f32 %v787_v4, %v786_v27  ;;  %v1983_v40 = vmov 1966171168  }
 0x205   :  { %v817_v52 = vadd.f32 %v816_v41, %v747_v42  ;;  %v826_v13 = vmul.f32 0.00390625, %v788_v29  ;;  %v837_v42 = vunpack.c.l.s4 %v1983_v40  ;;  %v840_v41 = vshrl.u32 %v839_v15, 7 }
 0x207   :  { %v818_v53 = vadd.f32 %v817_v52, %v749_v59  ;;  %v829_v20 = vadd.f32 1e-05, %v826_v13  ;;  %v838_v19 = vunpack.c.0.s8 %v837_v42  ;;  %v859_v13 = vsub.s32 1, %v840_v41 }
 0x209   :  { %v819_v12 = vadd.f32 %v818_v53, %v751_v54  ;;  %1884 = vrsqrt.f32 %v829_v20  ;;  %v841_v52 = vsub.s32 %v838_v19, %v840_v41 }
 0x20b   :  { %v820_v30 = vrot.slane %v819_v12, 4 }
 0x20d   :  { %v821_v10 = vadd.f32 %v820_v30, %v819_v12 }
 0x20f   :  { %v822_v51 = vrot.slane %v821_v10, 2 }
 0x211   :  { %v823_v8 = vadd.f32 %v822_v51, %v821_v10  ;;  %v828_v10 = vld [vmem:[%s3020_s2] sm:$0x3]  ;;  %v855_v51 = vsub.s32 0, %v840_v41 }
 0x213   :  { %v824_v55 = vrot.slane %v823_v8, 1 }
 0x215   :  { %v825_v37 = vadd.f32 %v824_v55, %v823_v8 }
 0x216   :  { %v1885_v59 = vpop.eup %1884 }
 0x217   :  { %v827_v49 = vmul.f32 0.00390625, %v825_v37 }
 0x219   :  { %v830_v34 = vadd.f32 1e-05, %v827_v49  ;;  %v927_v49 = vld [vmem:[%s3021_s3] sm:$0x3] }
 0x21a   :  { %v2616_v27 = vrot.slane %v927_v49, %v859_v13  ;;  %v2624_v37 = vrot.slane %v927_v49, %v855_v51 }
 0x21b   :  { %1886 = vrsqrt.f32 %v830_v34 }
 0x228   :  { %v1887_v54 = vpop.eup %1886 }
 0x229   :  { %v835_v12 = vcombine.low %v1885_v59, %v1887_v54 }
 0x22b   :  { %v842_v30 = vrot.slane %v835_v12, %v841_v52 }
 0x22d   :  { %v849_v8 = vrot.slane %v842_v30, %v841_v52 }
 0x22f   :  { %v851_v20 = vmul.f32 %v849_v8, %v828_v10 }
 0x231   :  { %v2614_v4 = vrot.slane %v851_v20, %v859_v13  ;;  %v2622_v55 = vrot.slane %v851_v20, %v855_v51 }
 0x233   :  { %v926_v53 = vmul.f32 %v2614_v4, %v687_v14  ;;  %v863_v34 = vmul.f32 %v2622_v55, %v2228_v35  ;;  %v2630_v40 = vmul.f32 %v2614_v4, %v2292_v58  ;;  %v865_v42 = vmul.f32 %v2622_v55, %v2232_v31 }
 0x234   :  { %v2636_v14 = vmul.f32 %v2614_v4, %v2296_v18  ;;  %v2640_v15 = vmul.f32 %v2622_v55, %v2236_v38  ;;  %v868_v19 = vmul.f32 %v2614_v4, %v2312_v39  ;;  %v2646_v35 = vmul.f32 %v2622_v55, %v2244_v0 }
 0x235   :  { %v2620_v29 = vadd.f32 %v2616_v27, %v926_v53  ;;  %v870_v58 = vmul.f32 %v2614_v4, %v2326_v5  ;;  %v2652_v31 = vmul.f32 %v2614_v4, %v2336_v63  ;;  %v895_v18 = vmul.f32 %v2622_v55, %v2354_v22 }
 0x236   :  { %v897_v38 = vmul.f32 %v2622_v55, %v2366_v26  ;;  %v899_v39 = vmul.f32 %v2622_v55, %v2378_v6  ;;  %v900_v0 = vmul.f32 %v2614_v4, %v2504_v24  ;;  %v901_v41 = vmul.f32 %v2622_v55, %v2390_v47 }
 0x237   :  { %v902_v5 = vmul.f32 %v2614_v4, %v2516_v28  ;;  %v903_v63 = vmul.f32 %v2622_v55, %v2402_v1  ;;  %v904_v22 = vmul.f32 %v2614_v4, %v2528_v11  ;;  %v905_v26 = vmul.f32 %v2622_v55, %v2414_v9 }
 0x238   :  { %v906_v6 = vmul.f32 %v2614_v4, %v2536_v44  ;;  %v907_v24 = vmul.f32 %v2622_v55, %v2426_v45  ;;  %v908_v47 = vmul.f32 %v2614_v4, %v2548_v61  ;;  %v909_v28 = vmul.f32 %v2622_v55, %v2438_v32 }
 0x239   :  { %v910_v1 = vmul.f32 %v2614_v4, %v2554_v57  ;;  %v911_v11 = vmul.f32 %v2622_v55, %v2450_v33  ;;  %v912_v9 = vmul.f32 %v2614_v4, %v2562_v60  ;;  %v913_v44 = vmul.f32 %v2622_v55, %v2462_v56 }
 0x23a   :  { %v914_v45 = vmul.f32 %v2614_v4, %v2568_v16  ;;  %v915_v61 = vmul.f32 %v2622_v55, %v2474_v36  ;;  %v916_v32 = vmul.f32 %v2614_v4, %v2574_v46  ;;  %v917_v57 = vmul.f32 %v2622_v55, %v2486_v23 }
 0x23b   :  { %v918_v33 = vmul.f32 %v2614_v4, %v2580_v25  ;;  %v919_v60 = vmul.f32 %v2622_v55, %v2498_v21  ;;  %v920_v56 = vmul.f32 %v2614_v4, %v2586_v62  ;;  %v921_v16 = vmul.f32 %v2622_v55, %v2510_v17 }
 0x23c   :  { %v922_v36 = vmul.f32 %v2614_v4, %v2592_v43  ;;  %v923_v46 = vmul.f32 %v2622_v55, %v2522_v7  ;;  %v924_v23 = vmul.f32 %v2614_v4, %v2598_v3  ;;  %v925_v25 = vmul.f32 %v2622_v55, %v2542_v50 }
 0x23d   :  { %v939_v21 = vadd.f32 %v2624_v37, %v863_v34  ;;  %v941_v59 = vadd.f32 %v2624_v37, %v865_v42  ;;  %v944_v62 = vadd.f32 %v2616_v27, %v868_v19  ;;  %v946_v17 = vadd.f32 %v2616_v27, %v870_v58 }
 0x23e   :  { %v2717_v52 = vadd.f32 %v2624_v37, %v895_v18  ;;  %v2720_v43 = vadd.f32 %v2624_v37, %v897_v38  ;;  %v2723_v7 = vadd.f32 %v2624_v37, %v899_v39  ;;  %v2726_v3 = vadd.f32 %v2616_v27, %v900_v0 }
 0x23f   :  { %v2729_v50 = vadd.f32 %v2624_v37, %v901_v41  ;;  %v2732_v54 = vadd.f32 %v2616_v27, %v902_v5  ;;  %v2735_v12 = vadd.f32 %v2624_v37, %v903_v63  ;;  %v2738_v30 = vadd.f32 %v2616_v27, %v904_v22 }
 0x240   :  { %v2741_v10 = vadd.f32 %v2624_v37, %v905_v26  ;;  %v2744_v8 = vadd.f32 %v2616_v27, %v906_v6  ;;  %v2747_v13 = vadd.f32 %v2624_v37, %v907_v24  ;;  %v2750_v49 = vadd.f32 %v2616_v27, %v908_v47 }
 0x241   :  { %v2753_v20 = vadd.f32 %v2624_v37, %v909_v28  ;;  %v2756_v53 = vadd.f32 %v2616_v27, %v910_v1  ;;  %v2759_v51 = vadd.f32 %v2624_v37, %v911_v11  ;;  %v2762_v34 = vadd.f32 %v2616_v27, %v912_v9 }
 0x242   :  { %v2765_v42 = vadd.f32 %v2624_v37, %v913_v44  ;;  %v2768_v19 = vadd.f32 %v2616_v27, %v914_v45  ;;  %v2771_v58 = vadd.f32 %v2624_v37, %v915_v61  ;;  %v2774_v18 = vadd.f32 %v2616_v27, %v916_v32  ;;  %v3119_v44 = vld [vmem:[#allocation28_spill] sm:$0xff]  ;;  %v3120_v61 = vld [vmem:[#allocation39_spill] sm:$0xff] }
 0x243   :  { %v2777_v38 = vadd.f32 %v2624_v37, %v917_v57  ;;  %v2780_v39 = vadd.f32 %v2616_v27, %v918_v33  ;;  %v2783_v0 = vadd.f32 %v2624_v37, %v919_v60  ;;  %v2786_v41 = vadd.f32 %v2616_v27, %v920_v56  ;;  %v3121_v33 = vld [vmem:[#allocation40_spill] sm:$0xff] }
 0x244   :  { %v2789_v5 = vadd.f32 %v2624_v37, %v921_v16  ;;  %v2792_v63 = vadd.f32 %v2616_v27, %v922_v36  ;;  %v2795_v22 = vadd.f32 %v2624_v37, %v923_v46  ;;  %v2798_v26 = vadd.f32 %v2616_v27, %v924_v23 }
 0x245   :  { %v2801_v6 = vadd.f32 %v2624_v37, %v925_v25  ;;  %v940_v24 = vadd.f32 %v2616_v27, %v2630_v40  ;;  %v874_v47 = vmul.f32 %v2614_v4, %v2348_v48  ;;  %v942_v28 = vadd.f32 %v2616_v27, %v2636_v14 }
 0x246   :  { %v1003_v1 = vmax.f32 %v939_v21, 0.0  ;;  %v1005_v11 = vmax.f32 %v941_v59, 0.0  ;;  %v871_v9 = vmul.f32 %v2622_v55, %v2248_v2  ;;  %v873_v45 = vmul.f32 %v2622_v55, %v3119_v44 }
 0x247   :  { %v876_v32 = vmul.f32 %v2614_v4, %v3120_v61  ;;  %v1004_v57 = vmax.f32 %v940_v24, 0.0  ;;  %v878_v40 = vmul.f32 %v2614_v4, %v3121_v33  ;;  %v1006_v60 = vmax.f32 %v942_v28, 0.0 }
 0x248   :  { %v1008_v48 = vmax.f32 %v944_v62, 0.0  ;;  %v1010_v56 = vmax.f32 %v946_v17, 0.0  ;;  %v943_v14 = vadd.f32 %v2624_v37, %v2640_v15  ;;  %v1067_v16 = vpack.c.bf16 %v1005_v11, %v1003_v1  ;;  %v3122_v17 = vld [vmem:[#allocation29_spill] sm:$0xff]  ;;  %v3125_v1 = vld [vmem:[#allocation42_spill] sm:$0xff] }
 0x249   :  { %v945_v2 = vadd.f32 %v2624_v37, %v2646_v35  ;;  %v948_v36 = vadd.f32 %v2616_v27, %v2652_v31  ;;  %v950_v46 = vadd.f32 %v2616_v27, %v874_v47  ;;  %v1068_v23 = vpack.c.bf16 %v1006_v60, %v1004_v57  ;;  %v3123_v35 = vld [vmem:[#allocation30_spill] sm:$0xff]  ;;  %v3124_v31 = vld [vmem:[#allocation41_spill] sm:$0xff] }
 0x24a   :  { %v947_v25 = vadd.f32 %v2624_v37, %v871_v9  ;;  %v949_v21 = vadd.f32 %v2624_v37, %v873_v45  ;;  %v952_v59 = vadd.f32 %v2616_v27, %v876_v32  ;;  %v954_v62 = vadd.f32 %v2616_v27, %v878_v40 }
 0x24b   :  { %1259 = vmatprep.mubr.bf16.mxu1 %v1068_v23  ;;  %v1070_v15 = vpack.c.bf16 %v1010_v56, %v1008_v48  ;;  %v875_v24 = vmul.f32 %v2622_v55, %v3122_v17  ;;  %v877_v28 = vmul.f32 %v2622_v55, %v3123_v35  ;;  %v880_v47 = vmul.f32 %v2614_v4, %v3124_v31 }
 0x24c   :  { %v882_v11 = vmul.f32 %v2614_v4, %v3125_v1  ;;  %1260 = vmatmul.mubr.bf16.vlgmr.msra.gmra.mxu1 %v1067_v16  ;;  %v1007_v9 = vmax.f32 %v943_v14, 0.0  ;;  %v1009_v44 = vmax.f32 %v945_v2, 0.0  ;;  %v1012_v45 = vmax.f32 %v948_v36, 0.0 }
 0x24d   :  { %1267 = vmatprep.mubr.bf16.mxu1 %v1070_v15  ;;  %v1014_v61 = vmax.f32 %v950_v46, 0.0  ;;  %v1011_v32 = vmax.f32 %v947_v25, 0.0  ;;  %v1013_v57 = vmax.f32 %v949_v21, 0.0  ;;  %v1066_v33 = vmax.f32 %v2620_v29, 0.0 }
 0x24e   :  { %v1016_v40 = vmax.f32 %v952_v59, 0.0  ;;  %v1018_v60 = vmax.f32 %v954_v62, 0.0  ;;  %v2838_v48 = vadd.f32 %v2624_v37, %v875_v24  ;;  %v2841_v56 = vadd.f32 %v2624_v37, %v877_v28 }
 0x24f   :  { %v2844_v23 = vadd.f32 %v2616_v27, %v880_v47  ;;  %v2847_v14 = vadd.f32 %v2616_v27, %v882_v11  ;;  %v1069_v16 = vpack.c.bf16 %v1009_v44, %v1007_v9  ;;  %v1072_v2 = vpack.c.bf16 %v1014_v61, %v1012_v45 }
 0x250   :  { %v1035_v36 = vmax.f32 %v2717_v52, 0.0  ;;  %v1037_v29 = vmax.f32 %v2720_v43, 0.0  ;;  %v1071_v46 = vpack.c.bf16 %v1013_v57, %v1011_v32  ;;  %v1040_v25 = vmax.f32 %v2726_v3, 0.0 }
 0x251   :  { %v1042_v21 = vmax.f32 %v2732_v54, 0.0  ;;  %v1039_v59 = vmax.f32 %v2723_v7, 0.0  ;;  %v1074_v62 = vpack.c.bf16 %v1018_v60, %v1016_v40  ;;  %v1041_v17 = vmax.f32 %v2729_v50, 0.0  ;;  %v3127_v40 = vld [vmem:[#allocation32_spill] sm:$0xff]  ;;  %v3128_v60 = vld [vmem:[#allocation43_spill] sm:$0xff] }
 0x252   :  { %v2854_v15 = vpack.c.bf16 %v1037_v29, %v1035_v36  ;;  %v1044_v24 = vmax.f32 %v2738_v30, 0.0  ;;  %v1046_v52 = vmax.f32 %v2744_v8, 0.0  ;;  %v1043_v43 = vmax.f32 %v2735_v12, 0.0 }
 0x253   :  { %v2858_v35 = vpack.c.bf16 %v1042_v21, %v1040_v25  ;;  %v1045_v3 = vmax.f32 %v2741_v10, 0.0  ;;  %v2863_v54 = vpack.c.bf16 %v1041_v17, %v1039_v59  ;;  %v1048_v7 = vmax.f32 %v2750_v49, 0.0 }
 0x254   :  { %1268 = vmatmul.mubr.bf16.gmra.mxu1 %v1069_v16  ;;  %v1050_v28 = vmax.f32 %v2756_v53, 0.0  ;;  %v1047_v50 = vmax.f32 %v2747_v13, 0.0  ;;  %v2868_v31 = vpack.c.bf16 %v1046_v52, %v1044_v24  ;;  %v1049_v47 = vmax.f32 %v2753_v20, 0.0  ;;  %v3131_v24 = vld [vmem:[#allocation34_spill] sm:$0xff] }
 0x255   :  { %1275 = vmatprep.mubr.bf16.mxu1 %v1072_v2  ;;  %v2870_v30 = vpack.c.bf16 %v1045_v3, %v1043_v43  ;;  %v1052_v8 = vmax.f32 %v2762_v34, 0.0  ;;  %v1054_v10 = vmax.f32 %v2768_v19, 0.0  ;;  %v1051_v1 = vmax.f32 %v2759_v51, 0.0  ;;  %v3129_v2 = vld [vmem:[#allocation44_spill] sm:$0xff]  ;;  %v3132_v43 = vld [vmem:[#allocation45_spill] sm:$0xff] }
 0x256   :  { %v2874_v12 = vpack.c.bf16 %v1050_v28, %v1048_v7  ;;  %v1053_v49 = vmax.f32 %v2765_v42, 0.0  ;;  %v2879_v11 = vpack.c.bf16 %v1049_v47, %v1047_v50  ;;  %v1056_v13 = vmax.f32 %v2774_v18, 0.0  ;;  %v3133_v7 = vld [vmem:[#allocation46_spill] sm:$0xff] }
 0x257   :  { %v1058_v53 = vmax.f32 %v2780_v39, 0.0  ;;  %v1055_v9 = vmax.f32 %v2771_v58, 0.0  ;;  %v2884_v44 = vpack.c.bf16 %v1054_v10, %v1052_v8  ;;  %v1057_v34 = vmax.f32 %v2777_v38, 0.0 }
 0x258   :  { %v2886_v20 = vpack.c.bf16 %v1053_v49, %v1051_v1  ;;  %v1060_v19 = vmax.f32 %v2786_v41, 0.0  ;;  %v1062_v51 = vmax.f32 %v2792_v63, 0.0  ;;  %v1059_v42 = vmax.f32 %v2783_v0, 0.0  ;;  %v3126_v0 = vld [vmem:[#allocation31_spill] sm:$0xff] }
 0x259   :  { %v2890_v45 = vpack.c.bf16 %v1058_v53, %v1056_v13  ;;  %v1061_v18 = vmax.f32 %v2789_v5, 0.0  ;;  %v2895_v61 = vpack.c.bf16 %v1057_v34, %v1055_v9  ;;  %v1064_v58 = vmax.f32 %v2798_v26, 0.0  ;;  %v3134_v9 = vld [vmem:[#allocation35_spill] sm:$0xff] }
 0x25a   :  { %v1063_v39 = vmax.f32 %v2795_v22, 0.0  ;;  %v1065_v32 = vmax.f32 %v2801_v6, 0.0  ;;  %v2900_v38 = vpack.c.bf16 %v1062_v51, %v1060_v19  ;;  %v879_v5 = vmul.f32 %v2622_v55, %v3126_v0  ;;  %v3135_v19 = vld [vmem:[#allocation36_spill] sm:$0xff] }
 0x25b   :  { %v2902_v41 = vpack.c.bf16 %v1061_v18, %v1059_v42  ;;  %v2904_v57 = vpack.c.bf16 %v1066_v33, %v1064_v58  ;;  %v881_v26 = vmul.f32 %v2622_v55, %v3127_v40  ;;  %v1015_v22 = vmax.f32 %v2838_v48, 0.0  ;;  %v3136_v58 = vld [vmem:[#allocation12_spill] sm:$0xff] }
 0x25c   :  { %1276 = vmatmul.mubr.bf16.gmra.mxu1 %v1071_v46  ;;  %v2906_v63 = vpack.c.bf16 %v1065_v32, %v1063_v39  ;;  %v1017_v6 = vmax.f32 %v2841_v56, 0.0  ;;  %v884_v16 = vmul.f32 %v2614_v4, %v3128_v60  ;;  %v886_v36 = vmul.f32 %v2614_v4, %v3129_v2  ;;  %v3137_v32 = vld [vmem:[#allocation13_spill] sm:$0xff] }
 0x25d   :  { %1283 = vmatprep.mubr.bf16.mxu1 %v1074_v62  ;;  %v1020_v33 = vmax.f32 %v2844_v23, 0.0  ;;  %v1022_v29 = vmax.f32 %v2847_v14, 0.0  ;;  %v955_v46 = vadd.f32 %v2624_v37, %v879_v5  ;;  %v957_v25 = vadd.f32 %v2624_v37, %v881_v26  ;;  %v3130_v62 = vld [vmem:[#allocation33_spill] sm:$0xff] }
 0x25e   :  { %v1073_v21 = vpack.c.bf16 %v1017_v6, %v1015_v22  ;;  %v960_v59 = vadd.f32 %v2616_v27, %v884_v16  ;;  %v962_v48 = vadd.f32 %v2616_v27, %v886_v36  ;;  %v883_v17 = vmul.f32 %v2622_v55, %v3130_v62  ;;  %v3138_v36 = vld [vmem:[#allocation37_spill] sm:$0xff] }
 0x25f   :  { %v1076_v56 = vpack.c.bf16 %v1022_v29, %v1020_v33  ;;  %v885_v23 = vmul.f32 %v2622_v55, %v3131_v24  ;;  %v1019_v52 = vmax.f32 %v955_v46, 0.0  ;;  %v1021_v14 = vmax.f32 %v957_v25, 0.0  ;;  %v3139_v29 = vld [vmem:[#allocation38_spill] sm:$0xff] }
 0x260   :  { %v888_v3 = vmul.f32 %v2614_v4, %v3132_v43  ;;  %v890_v28 = vmul.f32 %v2614_v4, %v3133_v7  ;;  %v1024_v50 = vmax.f32 %v960_v59, 0.0  ;;  %v1026_v47 = vmax.f32 %v962_v48, 0.0  ;;  %v3140_v59 = vld [vmem:[#allocation14_spill] sm:$0xff] }
 0x261   :  { %v959_v8 = vadd.f32 %v2624_v37, %v883_v17  ;;  %v961_v10 = vadd.f32 %v2624_v37, %v885_v23  ;;  %v1075_v1 = vpack.c.bf16 %v1021_v14, %v1019_v52  ;;  %v887_v34 = vmul.f32 %v2622_v55, %v3134_v9 }
 0x262   :  { %v964_v49 = vadd.f32 %v2616_v27, %v888_v3  ;;  %v966_v13 = vadd.f32 %v2616_v27, %v890_v28  ;;  %v1078_v53 = vpack.c.bf16 %v1026_v47, %v1024_v50  ;;  %v889_v51 = vmul.f32 %v2622_v55, %v3135_v19 }
 0x263   :  { %v1023_v42 = vmax.f32 %v959_v8, 0.0  ;;  %v1025_v18 = vmax.f32 %v961_v10, 0.0  ;;  %v892_v39 = vmul.f32 %v2614_v4, %v3136_v58  ;;  %v894_v0 = vmul.f32 %v2614_v4, %v3137_v32 }
 0x264   :  { %1284 = vmatmul.mubr.bf16.gmra.mxu1 %v1073_v21  ;;  %v1028_v5 = vmax.f32 %v964_v49, 0.0  ;;  %v1030_v40 = vmax.f32 %v966_v13, 0.0  ;;  %v963_v26 = vadd.f32 %v2624_v37, %v887_v34  ;;  %v965_v22 = vadd.f32 %v2624_v37, %v889_v51 }
 0x265   :  { %1291 = vmatprep.mubr.bf16.mxu1 %v1076_v56  ;;  %v1077_v6 = vpack.c.bf16 %v1025_v18, %v1023_v42  ;;  %v968_v60 = vadd.f32 %v2616_v27, %v892_v39  ;;  %v970_v16 = vadd.f32 %v2616_v27, %v894_v0  ;;  %v891_v33 = vmul.f32 %v2622_v55, %v3138_v36  ;;  %v3141_v56 = vld [vmem:[#allocation15_spill] sm:$0xff] }
 0x266   :  { %v1080_v2 = vpack.c.bf16 %v1030_v40, %v1028_v5  ;;  %v893_v46 = vmul.f32 %v2622_v55, %v3139_v29  ;;  %v1027_v25 = vmax.f32 %v963_v26, 0.0  ;;  %v1029_v21 = vmax.f32 %v965_v22, 0.0 }
 0x267   :  { %v896_v48 = vmul.f32 %v2614_v4, %v3140_v59  ;;  %v898_v62 = vmul.f32 %v2614_v4, %v3141_v56  ;;  %v1032_v17 = vmax.f32 %v968_v60, 0.0  ;;  %v1034_v24 = vmax.f32 %v970_v16, 0.0 }
 0x268   :  { %v967_v23 = vadd.f32 %v2624_v37, %v891_v33  ;;  %v969_v52 = vadd.f32 %v2624_v37, %v893_v46  ;;  %v1079_v14 = vpack.c.bf16 %v1029_v21, %v1027_v25 }
 0x269   :  { %v972_v43 = vadd.f32 %v2616_v27, %v896_v48  ;;  %v974_v3 = vadd.f32 %v2616_v27, %v898_v62  ;;  %v1082_v55 = vpack.c.bf16 %v1034_v24, %v1032_v17 }
 0x26a   :  { %v1031_v7 = vmax.f32 %v967_v23, 0.0  ;;  %v1033_v28 = vmax.f32 %v969_v52, 0.0 }
 0x26b   :  { %v1036_v50 = vmax.f32 %v972_v43, 0.0  ;;  %v1038_v47 = vmax.f32 %v974_v3, 0.0 }
 0x26c   :  { %1292 = vmatmul.mubr.bf16.gmra.mxu1 %v1075_v1  ;;  %v1081_v8 = vpack.c.bf16 %v1033_v28, %v1031_v7 }
 0x26d   :  { %1299 = vmatprep.mubr.bf16.mxu1 %v1078_v53  ;;  %v1084_v4 = vpack.c.bf16 %v1038_v47, %v1036_v50 }
 0x274   :  { %1300 = vmatmul.mubr.bf16.gmra.mxu1 %v1077_v6 }
 0x275   :  { %1307 = vmatprep.mubr.bf16.mxu1 %v1080_v2 }
 0x27c   :  { %1308 = vmatmul.mubr.bf16.gmra.mxu1 %v1079_v14 }
 0x27d   :  { %1315 = vmatprep.mubr.bf16.mxu1 %v1082_v55 }
 0x284   :  { %1316 = vmatmul.mubr.bf16.gmra.mxu1 %v1081_v8 }
 0x285   :  { %1323 = vmatprep.mubr.bf16.mxu1 %v1084_v4 }
 0x28c   :  { %1324 = vmatmul.mubr.bf16.gmra.mxu1 %v2854_v15  ;;  %v2978_v15 = vld [vmem:[%s3023_s5] ss:$0 sm:$0xff]  ;;  %s1984_s5 = smov [#allocation8]  }
 0x28d   :  { %1331 = vmatprep.mubr.bf16.mxu1 %v2858_v35  ;;  %s1635_s19 = sshll.u32 %s1984_s5, 4  ;;  %s1636_s19 = int_to_ptr.vmem [resolvable:$true] %s1635_s19 }
 0x28e   :  { %s1948_s20 = scalar_lea.vmem %s1636_s19, 4096  ;;  %p1953_p2 = scmp.lt.s32.totalorder %s1636_s19, %s1636_s19 }
 0x28f   :  { %p1949_p1 = scmp.ne.s32.totalorder %s1636_s19, %s1948_s20  ;;  %p1954_p3 = scmp.lt.s32.totalorder %s1948_s20, %s1948_s20 }
 0x291   :  { %p1955_p4 = por %p1954_p3, %p1953_p2 }
 0x293   :  { %p1956_p5 = pnand %p1955_p4, %p1949_p1 }
 0x294   :  { %1332 = vmatmul.mubr.bf16.gmra.mxu1 %v2863_v54 }
 0x295   :  { %1339 = vmatprep.mubr.bf16.mxu1 %v2868_v31 }
 0x29c   :  { %1340 = vmatmul.mubr.bf16.gmra.mxu1 %v2870_v30 }
 0x29d   :  { %1347 = vmatprep.mubr.bf16.mxu1 %v2874_v12 }
 0x2a4   :  { %1348 = vmatmul.mubr.bf16.gmra.mxu1 %v2879_v11 }
 0x2a5   :  { %1355 = vmatprep.mubr.bf16.mxu1 %v2884_v44 }
 0x2ac   :  { %1356 = vmatmul.mubr.bf16.gmra.mxu1 %v2886_v20 }
 0x2ad   :  { %1363 = vmatprep.mubr.bf16.mxu1 %v2890_v45 }
 0x2b4   :  { %1364 = vmatmul.mubr.bf16.gmra.mxu1 %v2895_v61 }
 0x2b5   :  { %1371 = vmatprep.mubr.bf16.mxu1 %v2900_v38 }
 0x2bc   :  { %1372 = vmatmul.mubr.bf16.gmra.mxu1 %v2902_v41 }
 0x2bd   :  { %1379 = vmatprep.mubr.bf16.mxu1 %v2904_v57 }
 0x2c4   :  { %1380 = vmatmul.mubr.bf16.gmra.mxu1 %v2906_v63 }
 0x30c   :  { %v1713_v27 = vpop.f32.mrf.mxu1 }
 0x30e   :  { %v1714_v37 = vpop.f32.mrf.mxu1 }
 0x30f   :  { %v1715_v35 = vadd.f32 %v1714_v37, %v1713_v27 }
 0x310   :  { %v1716_v54 = vpop.f32.mrf.mxu1 }
 0x311   :  { %v1566_v31 = vadd.f32 %v1715_v35, %v2978_v15 }
 0x312   :  { %v1717_v30 = vpop.f32.mrf.mxu1 }
 0x313   :  { %1598 = vst [vmem:[#allocation8] sm:$0xff] %v1566_v31  ;;  %v1718_v12 = vadd.f32 %v1717_v30, %v1716_v54 }
 0x314   :  { %v1719_v11 = vpop.f32.mrf.mxu1 }
 0x315   :  { %v1567_v44 = vadd.f32 %v1718_v12, %v2978_v15 }
 0x316   :  { %v1720_v20 = vpop.f32.mrf.mxu1 }
 0x317   :  { %1599 = vst [vmem:[#allocation8 + $0x8] sm:$0xff] %v1567_v44  ;;  %v1721_v45 = vadd.f32 %v1720_v20, %v1719_v11 }
 0x318   :  { %v1722_v61 = vpop.f32.mrf.mxu1 }
 0x319   :  { %v1568_v38 = vadd.f32 %v1721_v45, %v2978_v15 }
 0x31a   :  { %v1723_v41 = vpop.f32.mrf.mxu1 }
 0x31b   :  { %1600 = vst [vmem:[#allocation8 + $0x10] sm:$0xff] %v1568_v38  ;;  %v1724_v57 = vadd.f32 %v1723_v41, %v1722_v61 }
 0x31c   :  { %v1725_v63 = vpop.f32.mrf.mxu1 }
 0x31d   :  { %v1569_v10 = vadd.f32 %v1724_v57, %v2978_v15 }
 0x31e   :  { %v1726_v1 = vpop.f32.mrf.mxu1 }
 0x31f   :  { %1601 = vst [vmem:[#allocation8 + $0x18] sm:$0xff] %v1569_v10  ;;  %v1727_v49 = vadd.f32 %v1726_v1, %v1725_v63 }
 0x320   :  { %v1728_v13 = vpop.f32.mrf.mxu1 }
 0x321   :  { %v1570_v53 = vadd.f32 %v1727_v49, %v2978_v15 }
 0x322   :  { %v1729_v9 = vpop.f32.mrf.mxu1 }
 0x323   :  { %1602 = vst [vmem:[#allocation8 + $0x20] sm:$0xff] %v1570_v53  ;;  %v1730_v34 = vadd.f32 %v1729_v9, %v1728_v13 }
 0x324   :  { %v1731_v19 = vpop.f32.mrf.mxu1 }
 0x325   :  { %v1571_v51 = vadd.f32 %v1730_v34, %v2978_v15 }
 0x326   :  { %v1732_v42 = vpop.f32.mrf.mxu1 }
 0x327   :  { %1603 = vst [vmem:[#allocation8 + $0x28] sm:$0xff] %v1571_v51  ;;  %v1733_v18 = vadd.f32 %v1732_v42, %v1731_v19 }
 0x328   :  { %v1734_v58 = vpop.f32.mrf.mxu1 }
 0x329   :  { %v1572_v39 = vadd.f32 %v1733_v18, %v2978_v15 }
 0x32a   :  { %v1735_v32 = vpop.f32.mrf.mxu1 }
 0x32b   :  { %1604 = vst [vmem:[#allocation8 + $0x30] sm:$0xff] %v1572_v39  ;;  %v1736_v0 = vadd.f32 %v1735_v32, %v1734_v58 }
 0x32c   :  { %v1737_v5 = vpop.f32.mrf.mxu1 }
 0x32d   :  { %v1573_v40 = vadd.f32 %v1736_v0, %v2978_v15 }
 0x32e   :  { %v1738_v26 = vpop.f32.mrf.mxu1 }
 0x32f   :  { %1605 = vst [vmem:[#allocation8 + $0x38] sm:$0xff] %v1573_v40  ;;  %v1739_v22 = vadd.f32 %v1738_v26, %v1737_v5 }
 0x330   :  { %v1740_v6 = vpop.f32.mrf.mxu1 }
 0x331   :  { %v1574_v60 = vadd.f32 %v1739_v22, %v2978_v15 }
 0x332   :  { %v1741_v16 = vpop.f32.mrf.mxu1 }
 0x333   :  { %1606 = vst [vmem:[#allocation8 + $0x40] sm:$0xff] %v1574_v60  ;;  %v1742_v2 = vadd.f32 %v1741_v16, %v1740_v6 }
 0x334   :  { %v1743_v36 = vpop.f32.mrf.mxu1 }
 0x335   :  { %v1575_v33 = vadd.f32 %v1742_v2, %v2978_v15 }
 0x336   :  { %v1744_v29 = vpop.f32.mrf.mxu1 }
 0x337   :  { %1607 = vst [vmem:[#allocation8 + $0x48] sm:$0xff] %v1575_v33  ;;  %v1745_v46 = vadd.f32 %v1744_v29, %v1743_v36 }
 0x338   :  { %v1746_v25 = vpop.f32.mrf.mxu1 }
 0x339   :  { %v1576_v21 = vadd.f32 %v1745_v46, %v2978_v15 }
 0x33a   :  { %v1747_v59 = vpop.f32.mrf.mxu1 }
 0x33b   :  { %1608 = vst [vmem:[#allocation8 + $0x50] sm:$0xff] %v1576_v21  ;;  %v1748_v48 = vadd.f32 %v1747_v59, %v1746_v25 }
 0x33c   :  { %v1749_v56 = vpop.f32.mrf.mxu1 }
 0x33d   :  { %v1577_v62 = vadd.f32 %v1748_v48, %v2978_v15 }
 0x33e   :  { %v1750_v17 = vpop.f32.mrf.mxu1 }
 0x33f   :  { %1609 = vst [vmem:[#allocation8 + $0x58] sm:$0xff] %v1577_v62  ;;  %v1751_v24 = vadd.f32 %v1750_v17, %v1749_v56 }
 0x340   :  { %v1752_v23 = vpop.f32.mrf.mxu1 }
 0x341   :  { %v1578_v52 = vadd.f32 %v1751_v24, %v2978_v15 }
 0x342   :  { %v1753_v14 = vpop.f32.mrf.mxu1 }
 0x343   :  { %1610 = vst [vmem:[#allocation8 + $0x60] sm:$0xff] %v1578_v52  ;;  %v1754_v43 = vadd.f32 %v1753_v14, %v1752_v23 }
 0x344   :  { %v1755_v3 = vpop.f32.mrf.mxu1 }
 0x345   :  { %v1579_v55 = vadd.f32 %v1754_v43, %v2978_v15 }
 0x346   :  { %v1756_v7 = vpop.f32.mrf.mxu1 }
 0x347   :  { %1611 = vst [vmem:[#allocation8 + $0x68] sm:$0xff] %v1579_v55  ;;  %v1757_v28 = vadd.f32 %v1756_v7, %v1755_v3 }
 0x348   :  { %v1758_v50 = vpop.f32.mrf.mxu1 }
 0x349   :  { %v1580_v47 = vadd.f32 %v1757_v28, %v2978_v15 }
 0x34a   :  { %v1759_v8 = vpop.f32.mrf.mxu1 }
 0x34b   :  { %1612 = vst [vmem:[#allocation8 + $0x70] sm:$0xff] %v1580_v47  ;;  %v1760_v4 = vadd.f32 %v1759_v8, %v1758_v50 }
 0x34c   :  { %v1761_v27 = vpop.f32.mrf.mxu1 }
 0x34d   :  { %v1581_v37 = vadd.f32 %v1760_v4, %v2978_v15 }
 0x34e   :  { %v1762_v35 = vpop.f32.mrf.mxu1 }
 0x34f   :  { %1613 = vst [vmem:[#allocation8 + $0x78] sm:$0xff] %v1581_v37  ;;  %v1763_v54 = vadd.f32 %v1762_v35, %v1761_v27 }
 0x350   :  { %v1764_v31 = vpop.f32.mrf.mxu1 }
 0x351   :  { %v1582_v30 = vadd.f32 %v1763_v54, %v2978_v15 }
 0x352   :  { %v1765_v12 = vpop.f32.mrf.mxu1 }
 0x353   :  { %1614 = vst [vmem:[#allocation8 + $0x80] sm:$0xff] %v1582_v30  ;;  %v1766_v11 = vadd.f32 %v1765_v12, %v1764_v31 }
 0x354   :  { %v1767_v44 = vpop.f32.mrf.mxu1 }
 0x355   :  { %v1583_v20 = vadd.f32 %v1766_v11, %v2978_v15 }
 0x356   :  { %v1768_v45 = vpop.f32.mrf.mxu1 }
 0x357   :  { %1615 = vst [vmem:[#allocation8 + $0x88] sm:$0xff] %v1583_v20  ;;  %v1769_v61 = vadd.f32 %v1768_v45, %v1767_v44 }
 0x358   :  { %v1770_v38 = vpop.f32.mrf.mxu1 }
 0x359   :  { %v1584_v41 = vadd.f32 %v1769_v61, %v2978_v15 }
 0x35a   :  { %v1771_v57 = vpop.f32.mrf.mxu1 }
 0x35b   :  { %1616 = vst [vmem:[#allocation8 + $0x90] sm:$0xff] %v1584_v41  ;;  %v1772_v63 = vadd.f32 %v1771_v57, %v1770_v38 }
 0x35c   :  { %v1773_v10 = vpop.f32.mrf.mxu1 }
 0x35d   :  { %v1585_v1 = vadd.f32 %v1772_v63, %v2978_v15 }
 0x35e   :  { %v1774_v49 = vpop.f32.mrf.mxu1 }
 0x35f   :  { %1617 = vst [vmem:[#allocation8 + $0x98] sm:$0xff] %v1585_v1  ;;  %v1775_v13 = vadd.f32 %v1774_v49, %v1773_v10 }
 0x360   :  { %v1776_v53 = vpop.f32.mrf.mxu1 }
 0x361   :  { %v1586_v9 = vadd.f32 %v1775_v13, %v2978_v15 }
 0x362   :  { %v1777_v34 = vpop.f32.mrf.mxu1 }
 0x363   :  { %1618 = vst [vmem:[#allocation8 + $0xa0] sm:$0xff] %v1586_v9  ;;  %v1778_v19 = vadd.f32 %v1777_v34, %v1776_v53 }
 0x364   :  { %v1779_v51 = vpop.f32.mrf.mxu1 }
 0x365   :  { %v1587_v42 = vadd.f32 %v1778_v19, %v2978_v15 }
 0x366   :  { %v1780_v18 = vpop.f32.mrf.mxu1 }
 0x367   :  { %1619 = vst [vmem:[#allocation8 + $0xa8] sm:$0xff] %v1587_v42  ;;  %v1781_v58 = vadd.f32 %v1780_v18, %v1779_v51 }
 0x368   :  { %v1782_v39 = vpop.f32.mrf.mxu1 }
 0x369   :  { %v1588_v32 = vadd.f32 %v1781_v58, %v2978_v15 }
 0x36a   :  { %v1783_v0 = vpop.f32.mrf.mxu1 }
 0x36b   :  { %1620 = vst [vmem:[#allocation8 + $0xb0] sm:$0xff] %v1588_v32  ;;  %v1784_v5 = vadd.f32 %v1783_v0, %v1782_v39 }
 0x36c   :  { %v1785_v40 = vpop.f32.mrf.mxu1 }
 0x36d   :  { %v1589_v26 = vadd.f32 %v1784_v5, %v2978_v15 }
 0x36e   :  { %v1786_v22 = vpop.f32.mrf.mxu1 }
 0x36f   :  { %1621 = vst [vmem:[#allocation8 + $0xb8] sm:$0xff] %v1589_v26  ;;  %v1787_v6 = vadd.f32 %v1786_v22, %v1785_v40 }
 0x370   :  { %v1788_v60 = vpop.f32.mrf.mxu1 }
 0x371   :  { %v1590_v16 = vadd.f32 %v1787_v6, %v2978_v15 }
 0x372   :  { %v1789_v2 = vpop.f32.mrf.mxu1 }
 0x373   :  { %1622 = vst [vmem:[#allocation8 + $0xc0] sm:$0xff] %v1590_v16  ;;  %v1790_v36 = vadd.f32 %v1789_v2, %v1788_v60 }
 0x374   :  { %v1791_v33 = vpop.f32.mrf.mxu1 }
 0x375   :  { %v1591_v29 = vadd.f32 %v1790_v36, %v2978_v15 }
 0x376   :  { %v1792_v46 = vpop.f32.mrf.mxu1 }
 0x377   :  { %1623 = vst [vmem:[#allocation8 + $0xc8] sm:$0xff] %v1591_v29  ;;  %v1793_v25 = vadd.f32 %v1792_v46, %v1791_v33 }
 0x378   :  { %v1794_v21 = vpop.f32.mrf.mxu1 }
 0x379   :  { %v1592_v59 = vadd.f32 %v1793_v25, %v2978_v15 }
 0x37a   :  { %v1795_v48 = vpop.f32.mrf.mxu1 }
 0x37b   :  { %1624 = vst [vmem:[#allocation8 + $0xd0] sm:$0xff] %v1592_v59  ;;  %v1796_v56 = vadd.f32 %v1795_v48, %v1794_v21 }
 0x37c   :  { %v1797_v62 = vpop.f32.mrf.mxu1 }
 0x37d   :  { %v1593_v17 = vadd.f32 %v1796_v56, %v2978_v15 }
 0x37e   :  { %v1798_v24 = vpop.f32.mrf.mxu1 }
 0x37f   :  { %1625 = vst [vmem:[#allocation8 + $0xd8] sm:$0xff] %v1593_v17  ;;  %v1799_v23 = vadd.f32 %v1798_v24, %v1797_v62 }
 0x380   :  { %v1800_v52 = vpop.f32.mrf.mxu1 }
 0x381   :  { %v1594_v14 = vadd.f32 %v1799_v23, %v2978_v15 }
 0x382   :  { %v1801_v43 = vpop.f32.mrf.mxu1 }
 0x383   :  { %1626 = vst [vmem:[#allocation8 + $0xe0] sm:$0xff] %v1594_v14  ;;  %v1802_v3 = vadd.f32 %v1801_v43, %v1800_v52 }
 0x384   :  { %v1803_v55 = vpop.f32.mrf.mxu1 }
 0x385   :  { %v1595_v7 = vadd.f32 %v1802_v3, %v2978_v15 }
 0x386   :  { %v1804_v28 = vpop.f32.mrf.mxu1 }
 0x387   :  { %1627 = vst [vmem:[#allocation8 + $0xe8] sm:$0xff] %v1595_v7  ;;  %v1805_v50 = vadd.f32 %v1804_v28, %v1803_v55 }
 0x388   :  { %v1806_v47 = vpop.f32.mrf.mxu1 }
 0x389   :  { %v1596_v8 = vadd.f32 %v1805_v50, %v2978_v15 }
 0x38a   :  { %v1807_v4 = vpop.f32.mrf.mxu1 }
 0x38b   :  { %1628 = vst [vmem:[#allocation8 + $0xf0] sm:$0xff] %v1596_v8  ;;  %v1808_v27 = vadd.f32 %v1807_v4, %v1806_v47 }
 0x38d   :  { %v1597_v37 = vadd.f32 %v1808_v27, %v2978_v15 }
 0x38f   :  { %1629 = vst [vmem:[#allocation8 + $0xf8] sm:$0xff] %v1597_v37 }
 0x390   :  { %1959 = shalt.err (!%p1956_p5)
}
 0x391   :  { %1641 = dma.vmem_to_hbm [thread:$0]  %s1636_s19, 4096, %s3024_s6, [#allocation4], %s1975_s24, %s1975_s24, %s1976_s25  }
 0x392   :  { %1972 = dma.done.wait [#allocation4], 4096  }
 0x393   :  { %1973 = vsyncadd [#allocation4], 4294963200 }
 0x394   :  { %1645 = vsyncpa [#allocation3], 1 }
 0x395   :  { %1646 = vsyncpa [#allocation6], 1 }
 0x396   :  { %1647 = vsyncpa [#allocation4], 1 }

</bundles_post_ra>
